<compile_context>
chip_gen: v6e
topology: v6e:2x2x1
jax: 0.10.0
libtpu: 0.0.40
codegen_flags: <defaults>
</compile_context>

<pallas_src>
import jax
import jax.numpy as jnp
from jax.experimental import pallas as pl
from jax.experimental.pallas import tpu as pltpu


def _mhja_kernel(x_ref, q_ref, wkv_ref, wo_ref, bo_ref, o_ref):
    """One batch-block per grid step.

    x_ref   : (bb, N, C)          tokens for this batch block
    q_ref   : (H, J, dh)          pre-scaled per-head joint queries (shared over batch)
    wkv_ref : (C, 2*inner)        fused K/V projection (reference column layout)
    wo_ref  : (H, dh, C)          per-head slice of to_out weight
    bo_ref  : (1, C)              to_out bias
    o_ref   : (bb, J, C)          output
    """
    bb, N, C = x_ref.shape
    heads, J, dh = q_ref.shape
    inner = heads * dh

    # Merge batch into rows for the projection (minor dim unchanged -> no tile
    # boundary crossing).
    x2 = x_ref[...].reshape(bb * N, C)                                   # (bb*N, C)

    # Single fused K/V projection for all heads: one MXU pass instead of 2*H.
    kv = jnp.dot(x2, wkv_ref[...],
                 preferred_element_type=jnp.float32)                     # (bb*N, 2*inner)

    # Hoisted: one broadcast of the (pre-scaled) joint queries over the batch block.
    q_all = jnp.broadcast_to(q_ref[...], (bb, heads, J, dh))             # (bb, H, J, dh)

    # Flat f32 accumulator for the output projection (no concat over heads).
    acc = jnp.zeros((bb * J, C), dtype=jnp.float32)

    for h in range(heads):  # static, fully unrolled; per-head work is tiny
        # Static per-head lane slices of the fused kv result.
        k_h = kv[:, h * dh:(h + 1) * dh].reshape(bb, N, dh)              # (bb, N, dh)
        v_h = kv[:, inner + h * dh: inner + (h + 1) * dh].reshape(bb, N, dh)

        q_h = q_all[:, h]                                                # (bb, J, dh)

        # Scores: contract last dims directly (no transpose), batched over bb.
        dots = jnp.einsum('bjd,bnd->bjn', q_h, k_h,
                          preferred_element_type=jnp.float32)            # (bb, J, N)
        dots = dots - jnp.max(dots, axis=-1, keepdims=True)
        p = jnp.exp(dots)
        attn = p * pl.reciprocal(jnp.sum(p, axis=-1, keepdims=True), approx=True)

        # Weighted values, batched over bb.
        o_h = jnp.einsum('bjn,bnd->bjd', attn, v_h,
                         preferred_element_type=jnp.float32)             # (bb, J, dh)

        # Project this head through its slice of to_out and accumulate (flat 2-D matmul).
        acc = acc + jnp.dot(o_h.reshape(bb * J, dh), wo_ref[h],
                            preferred_element_type=jnp.float32)          # (bb*J, C)

    out = (acc + bo_ref[...]).reshape(bb, J, C)
    o_ref[...] = out.astype(o_ref.dtype)


def _default_batch_blocks(batch, tokens, channels, heads):
    """Split the batch across the two TensorCores only on v7x AND only when the
    per-core work clearly exceeds the ~0.35 us per-grid-step fixed cost."""
    try:
        kind = jax.devices()[0].device_kind.lower()
    except Exception:
        kind = ""
    if "v7" not in kind or batch < 2 or batch % 2 != 0:
        return 1
    # Rough FLOP proxy for projections + attention; toy shapes stay single-step.
    approx_flops = 2 * batch * tokens * channels * (2 * channels) * 3
    if approx_flops < 8_000_000:
        return 1
    return 2


def multi_head_joint_attention(x, joint_emb, w_kv, w_out, b_out, *,
                               heads, dim_head, batch_blocks=None):
    B, N, C = x.shape
    J = joint_emb.shape[1]
    inner = heads * dim_head
    assert C == inner, "reshape in the reference module requires dim == heads*dim_head"
    scale = dim_head ** (-0.5)

    if batch_blocks is None:
        batch_blocks = _default_batch_blocks(B, N, C, heads)
    if B % batch_blocks != 0:
        batch_blocks = 1
    bb = B // batch_blocks

    # ---- tiny parameter prep outside the kernel ----
    # queries: (1, J, C) -> (H, J, dh), pre-scaled so the kernel never scales dots.
    q_heads = (joint_emb[0].reshape(J, heads, dim_head) * scale).transpose(1, 0, 2)
    # to_kv weight is passed unmodified: its column layout already matches the
    # reference's chunk(2) + per-head reshape (head h of K at h*dh:(h+1)*dh, etc.).
    # to_out: (inner, C) -> (H, dh, C)
    w_out_h = w_out.reshape(heads, dim_head, C)
    b_out2 = b_out.reshape(1, C)

    return pl.pallas_call(
        _mhja_kernel,
        out_shape=jax.ShapeDtypeStruct((B, J, C), x.dtype),
        grid=(batch_blocks,),
        in_specs=[
            pl.BlockSpec((bb, N, C), lambda b: (b, 0, 0)),               # x (batch block)
            pl.BlockSpec((heads, J, dim_head), lambda b: (0, 0, 0)),     # q per-head, scaled
            pl.BlockSpec((C, 2 * inner), lambda b: (0, 0)),              # fused w_kv
            pl.BlockSpec((heads, dim_head, C), lambda b: (0, 0, 0)),     # w_out per-head
            pl.BlockSpec((1, C), lambda b: (0, 0)),                      # b_out
        ],
        out_specs=pl.BlockSpec((bb, J, C), lambda b: (b, 0, 0)),
        compiler_params=pltpu.CompilerParams(
            dimension_semantics=("parallel",)),
    )(x, q_heads, w_kv, w_out_h, b_out2)


def _reference(x, joint_emb, w_kv, w_out, b_out, *, heads, dim_head):
    """Pure-JAX replica of the PyTorch forward (for a correctness check)."""
    B, N, C = x.shape
    J = joint_emb.shape[1]
    inner = heads * dim_head
    scale = dim_head ** (-0.5)

    q = jnp.broadcast_to(joint_emb, (B, J, C))
    q = q.reshape(B, J, heads, dim_head).transpose(0, 2, 1, 3)          # (B,H,J,dh)
    kv = x @ w_kv
    k, v = kv[..., :inner], kv[..., inner:]
    k = k.reshape(B, N, heads, dim_head).transpose(0, 2, 1, 3)          # (B,H,N,dh)
    v = v.reshape(B, N, heads, dim_head).transpose(0, 2, 1, 3)
    dots = jnp.einsum('bhid,bhjd->bhij', q, k) * scale                  # (B,H,J,N)
    attn = jax.nn.softmax(dots, axis=-1)
    out = jnp.einsum('bhij,bhjd->bhid', attn, v)                        # (B,H,J,dh)
    out = out.transpose(0, 2, 1, 3).reshape(B, J, inner)
    return out @ w_out + b_out


if __name__ == "__main__":
    # Module hyper-parameters (dim must equal heads * dim_head for the reshape).
    B, N = 2, 16
    heads, dim_head = 4, 8
    dim = heads * dim_head          # 32
    num_joints = 13
    inner = heads * dim_head

    key = jax.random.PRNGKey(0)
    kx, kj, kkv, kwo, kbo = jax.random.split(key, 5)

    x = jax.random.normal(kx, (B, N, dim), dtype=jnp.float32)

    # Deterministic "parameters" (shapes per nn.Module __init__, input-major weights):
    joint_emb = jax.random.normal(kj, (1, num_joints, dim), dtype=jnp.float32)
    w_kv = jax.random.normal(kkv, (dim, 2 * inner), dtype=jnp.float32) * 0.1
    w_out = jax.random.normal(kwo, (inner, dim), dtype=jnp.float32) * 0.1
    b_out = jax.random.normal(kbo, (1, dim), dtype=jnp.float32) * 0.1

    out = multi_head_joint_attention(
        x, joint_emb, w_kv, w_out, b_out, heads=heads, dim_head=dim_head)
    out = jax.block_until_ready(out)

    ref = _reference(x, joint_emb, w_kv, w_out, b_out,
                     heads=heads, dim_head=dim_head)
    assert out.shape == (B, num_joints, dim)
    assert jnp.allclose(out, ref, rtol=1e-3, atol=2e-3), "mismatch vs reference"

    print("KERNEL_OK")
</pallas_src>

<mosaic_0001>
module attributes {stable_mosaic.version = 11 : i64} {
  func.func @_mhja_kernel(%arg0: i32, %arg1: memref<2x16x32xf32, #tpu.memory_space<vmem>>, %arg2: memref<4x13x8xf32, #tpu.memory_space<vmem>>, %arg3: memref<32x64xf32, #tpu.memory_space<vmem>>, %arg4: memref<4x8x32xf32, #tpu.memory_space<vmem>>, %arg5: memref<1x32xf32, #tpu.memory_space<vmem>>, %arg6: memref<2x13x32xf32, #tpu.memory_space<vmem>>) attributes {dimension_semantics = [#tpu.dimension_semantics<parallel>], iteration_bounds = array<i64: 1>, scalar_prefetch = 0 : i64, scratch_operands = 0 : i64, tpu.core_type = #tpu.core_type<tc>, window_params = [{transform_indices = @transform_0, window_bounds = array<i64: 2, 16, 32>}, {pipeline_mode = #tpu.pipeline_mode<synchronous>, transform_indices = @transform_1, window_bounds = array<i64: 4, 13, 8>}, {pipeline_mode = #tpu.pipeline_mode<synchronous>, transform_indices = @transform_2, window_bounds = array<i64: 32, 64>}, {pipeline_mode = #tpu.pipeline_mode<synchronous>, transform_indices = @transform_3, window_bounds = array<i64: 4, 8, 32>}, {pipeline_mode = #tpu.pipeline_mode<synchronous>, transform_indices = @transform_4, window_bounds = array<i64: 1, 32>}, {transform_indices = @transform_5, window_bounds = array<i64: 2, 13, 32>}]} {
    %c0 = arith.constant 0 : index
    %c0_0 = arith.constant 0 : index
    %c0_1 = arith.constant 0 : index
    %0 = vector.load %arg1[%c0, %c0_0, %c0_1] : memref<2x16x32xf32, #tpu.memory_space<vmem>>, vector<2x16x32xf32>
    %1 = vector.shape_cast %0 : vector<2x16x32xf32> to vector<32x32xf32>
    %c0_2 = arith.constant 0 : index
    %c0_3 = arith.constant 0 : index
    %2 = vector.load %arg3[%c0_2, %c0_3] : memref<32x64xf32, #tpu.memory_space<vmem>>, vector<32x64xf32>
    %cst = arith.constant dense<0.000000e+00> : vector<32x64xf32>
    %3 = tpu.matmul %1, %2, %cst {dimension_numbers = #tpu.dot_dimension_numbers<[1], [0], [0], [1], [0, 0, 1, 1], [], []>} : vector<32x32xf32>, vector<32x64xf32>, vector<32x64xf32> -> vector<32x64xf32>
    %c0_4 = arith.constant 0 : index
    %c0_5 = arith.constant 0 : index
    %c0_6 = arith.constant 0 : index
    %4 = vector.load %arg2[%c0_4, %c0_5, %c0_6] : memref<4x13x8xf32, #tpu.memory_space<vmem>>, vector<4x13x8xf32>
    %5 = vector.shape_cast %4 : vector<4x13x8xf32> to vector<1x4x13x8xf32>
    %6 = vector.broadcast %5 : vector<1x4x13x8xf32> to vector<2x4x13x8xf32>
    %cst_7 = arith.constant 0.000000e+00 : f32
    %7 = vector.broadcast %cst_7 : f32 to vector<26x32xf32>
    %8 = vector.extract_strided_slice %3 {offsets = [0, 0], sizes = [32, 8], strides = [1, 1]} : vector<32x64xf32> to vector<32x8xf32>
    %9 = vector.shape_cast %8 : vector<32x8xf32> to vector<2x16x8xf32>
    %10 = vector.extract_strided_slice %3 {offsets = [0, 32], sizes = [32, 8], strides = [1, 1]} : vector<32x64xf32> to vector<32x8xf32>
    %11 = vector.shape_cast %10 : vector<32x8xf32> to vector<2x16x8xf32>
    %12 = vector.extract_strided_slice %6 {offsets = [0, 0, 0, 0], sizes = [2, 1, 13, 8], strides = [1, 1, 1, 1]} : vector<2x4x13x8xf32> to vector<2x1x13x8xf32>
    %13 = vector.shape_cast %12 : vector<2x1x13x8xf32> to vector<2x13x8xf32>
    "tpu.trace_start"() <{level = 10 : i32, message = "bjd,bnd->bjn"}> : () -> ()
    %cst_8 = arith.constant dense<0.000000e+00> : vector<2x13x16xf32>
    %14 = tpu.matmul %13, %9, %cst_8 {dimension_numbers = #tpu.dot_dimension_numbers<[2], [2], [1], [1], [0, 0, 0, 1, 1, 1], [0], [0]>} : vector<2x13x8xf32>, vector<2x16x8xf32>, vector<2x13x16xf32> -> vector<2x13x16xf32>
    "tpu.trace_stop"() : () -> ()
    %cst_9 = arith.constant dense<0xFF800000> : vector<2x13xf32>
    %15 = vector.multi_reduction <maximumf>, %14, %cst_9 [2] : vector<2x13x16xf32> to vector<2x13xf32>
    %16 = vector.shape_cast %15 : vector<2x13xf32> to vector<2x13x1xf32>
    %17 = vector.broadcast %16 : vector<2x13x1xf32> to vector<2x13x16xf32>
    %18 = arith.subf %14, %17 : vector<2x13x16xf32>
    %19 = math.exp %18 : vector<2x13x16xf32>
    %cst_10 = arith.constant dense<0.000000e+00> : vector<2x13xf32>
    %20 = vector.multi_reduction <add>, %19, %cst_10 [2] : vector<2x13x16xf32> to vector<2x13xf32>
    %21 = vector.shape_cast %20 : vector<2x13xf32> to vector<2x13x1xf32>
    %22 = tpu.reciprocal %21 {approx = true} : vector<2x13x1xf32> -> vector<2x13x1xf32>
    %23 = vector.broadcast %22 : vector<2x13x1xf32> to vector<2x13x16xf32>
    %24 = arith.mulf %19, %23 : vector<2x13x16xf32>
    "tpu.trace_start"() <{level = 10 : i32, message = "bjn,bnd->bjd"}> : () -> ()
    %cst_11 = arith.constant dense<0.000000e+00> : vector<2x13x8xf32>
    %25 = tpu.matmul %24, %11, %cst_11 {dimension_numbers = #tpu.dot_dimension_numbers<[2], [1], [1], [2], [0, 0, 0, 1, 1, 2], [0], [0]>} : vector<2x13x16xf32>, vector<2x16x8xf32>, vector<2x13x8xf32> -> vector<2x13x8xf32>
    "tpu.trace_stop"() : () -> ()
    %26 = vector.shape_cast %25 : vector<2x13x8xf32> to vector<26x8xf32>
    %c0_12 = arith.constant 0 : index
    %c0_13 = arith.constant 0 : index
    %c0_14 = arith.constant 0 : index
    %27 = vector.load %arg4[%c0_12, %c0_13, %c0_14] : memref<4x8x32xf32, #tpu.memory_space<vmem>>, vector<1x8x32xf32>
    %28 = vector.shape_cast %27 : vector<1x8x32xf32> to vector<8x32xf32>
    %cst_15 = arith.constant dense<0.000000e+00> : vector<26x32xf32>
    %29 = tpu.matmul %26, %28, %cst_15 {dimension_numbers = #tpu.dot_dimension_numbers<[1], [0], [0], [1], [0, 0, 1, 1], [], []>} : vector<26x8xf32>, vector<8x32xf32>, vector<26x32xf32> -> vector<26x32xf32>
    %30 = arith.addf %7, %29 : vector<26x32xf32>
    %31 = vector.extract_strided_slice %3 {offsets = [0, 8], sizes = [32, 8], strides = [1, 1]} : vector<32x64xf32> to vector<32x8xf32>
    %32 = vector.shape_cast %31 : vector<32x8xf32> to vector<2x16x8xf32>
    %33 = vector.extract_strided_slice %3 {offsets = [0, 40], sizes = [32, 8], strides = [1, 1]} : vector<32x64xf32> to vector<32x8xf32>
    %34 = vector.shape_cast %33 : vector<32x8xf32> to vector<2x16x8xf32>
    %35 = vector.extract_strided_slice %6 {offsets = [0, 1, 0, 0], sizes = [2, 1, 13, 8], strides = [1, 1, 1, 1]} : vector<2x4x13x8xf32> to vector<2x1x13x8xf32>
    %36 = vector.shape_cast %35 : vector<2x1x13x8xf32> to vector<2x13x8xf32>
    "tpu.trace_start"() <{level = 10 : i32, message = "bjd,bnd->bjn"}> : () -> ()
    %cst_16 = arith.constant dense<0.000000e+00> : vector<2x13x16xf32>
    %37 = tpu.matmul %36, %32, %cst_16 {dimension_numbers = #tpu.dot_dimension_numbers<[2], [2], [1], [1], [0, 0, 0, 1, 1, 1], [0], [0]>} : vector<2x13x8xf32>, vector<2x16x8xf32>, vector<2x13x16xf32> -> vector<2x13x16xf32>
    "tpu.trace_stop"() : () -> ()
    %cst_17 = arith.constant dense<0xFF800000> : vector<2x13xf32>
    %38 = vector.multi_reduction <maximumf>, %37, %cst_17 [2] : vector<2x13x16xf32> to vector<2x13xf32>
    %39 = vector.shape_cast %38 : vector<2x13xf32> to vector<2x13x1xf32>
    %40 = vector.broadcast %39 : vector<2x13x1xf32> to vector<2x13x16xf32>
    %41 = arith.subf %37, %40 : vector<2x13x16xf32>
    %42 = math.exp %41 : vector<2x13x16xf32>
    %cst_18 = arith.constant dense<0.000000e+00> : vector<2x13xf32>
    %43 = vector.multi_reduction <add>, %42, %cst_18 [2] : vector<2x13x16xf32> to vector<2x13xf32>
    %44 = vector.shape_cast %43 : vector<2x13xf32> to vector<2x13x1xf32>
    %45 = tpu.reciprocal %44 {approx = true} : vector<2x13x1xf32> -> vector<2x13x1xf32>
    %46 = vector.broadcast %45 : vector<2x13x1xf32> to vector<2x13x16xf32>
    %47 = arith.mulf %42, %46 : vector<2x13x16xf32>
    "tpu.trace_start"() <{level = 10 : i32, message = "bjn,bnd->bjd"}> : () -> ()
    %cst_19 = arith.constant dense<0.000000e+00> : vector<2x13x8xf32>
    %48 = tpu.matmul %47, %34, %cst_19 {dimension_numbers = #tpu.dot_dimension_numbers<[2], [1], [1], [2], [0, 0, 0, 1, 1, 2], [0], [0]>} : vector<2x13x16xf32>, vector<2x16x8xf32>, vector<2x13x8xf32> -> vector<2x13x8xf32>
    "tpu.trace_stop"() : () -> ()
    %49 = vector.shape_cast %48 : vector<2x13x8xf32> to vector<26x8xf32>
    %c1 = arith.constant 1 : index
    %c0_20 = arith.constant 0 : index
    %c0_21 = arith.constant 0 : index
    %50 = vector.load %arg4[%c1, %c0_20, %c0_21] : memref<4x8x32xf32, #tpu.memory_space<vmem>>, vector<1x8x32xf32>
    %51 = vector.shape_cast %50 : vector<1x8x32xf32> to vector<8x32xf32>
    %cst_22 = arith.constant dense<0.000000e+00> : vector<26x32xf32>
    %52 = tpu.matmul %49, %51, %cst_22 {dimension_numbers = #tpu.dot_dimension_numbers<[1], [0], [0], [1], [0, 0, 1, 1], [], []>} : vector<26x8xf32>, vector<8x32xf32>, vector<26x32xf32> -> vector<26x32xf32>
    %53 = arith.addf %30, %52 : vector<26x32xf32>
    %54 = vector.extract_strided_slice %3 {offsets = [0, 16], sizes = [32, 8], strides = [1, 1]} : vector<32x64xf32> to vector<32x8xf32>
    %55 = vector.shape_cast %54 : vector<32x8xf32> to vector<2x16x8xf32>
    %56 = vector.extract_strided_slice %3 {offsets = [0, 48], sizes = [32, 8], strides = [1, 1]} : vector<32x64xf32> to vector<32x8xf32>
    %57 = vector.shape_cast %56 : vector<32x8xf32> to vector<2x16x8xf32>
    %58 = vector.extract_strided_slice %6 {offsets = [0, 2, 0, 0], sizes = [2, 1, 13, 8], strides = [1, 1, 1, 1]} : vector<2x4x13x8xf32> to vector<2x1x13x8xf32>
    %59 = vector.shape_cast %58 : vector<2x1x13x8xf32> to vector<2x13x8xf32>
    "tpu.trace_start"() <{level = 10 : i32, message = "bjd,bnd->bjn"}> : () -> ()
    %cst_23 = arith.constant dense<0.000000e+00> : vector<2x13x16xf32>
    %60 = tpu.matmul %59, %55, %cst_23 {dimension_numbers = #tpu.dot_dimension_numbers<[2], [2], [1], [1], [0, 0, 0, 1, 1, 1], [0], [0]>} : vector<2x13x8xf32>, vector<2x16x8xf32>, vector<2x13x16xf32> -> vector<2x13x16xf32>
    "tpu.trace_stop"() : () -> ()
    %cst_24 = arith.constant dense<0xFF800000> : vector<2x13xf32>
    %61 = vector.multi_reduction <maximumf>, %60, %cst_24 [2] : vector<2x13x16xf32> to vector<2x13xf32>
    %62 = vector.shape_cast %61 : vector<2x13xf32> to vector<2x13x1xf32>
    %63 = vector.broadcast %62 : vector<2x13x1xf32> to vector<2x13x16xf32>
    %64 = arith.subf %60, %63 : vector<2x13x16xf32>
    %65 = math.exp %64 : vector<2x13x16xf32>
    %cst_25 = arith.constant dense<0.000000e+00> : vector<2x13xf32>
    %66 = vector.multi_reduction <add>, %65, %cst_25 [2] : vector<2x13x16xf32> to vector<2x13xf32>
    %67 = vector.shape_cast %66 : vector<2x13xf32> to vector<2x13x1xf32>
    %68 = tpu.reciprocal %67 {approx = true} : vector<2x13x1xf32> -> vector<2x13x1xf32>
    %69 = vector.broadcast %68 : vector<2x13x1xf32> to vector<2x13x16xf32>
    %70 = arith.mulf %65, %69 : vector<2x13x16xf32>
    "tpu.trace_start"() <{level = 10 : i32, message = "bjn,bnd->bjd"}> : () -> ()
    %cst_26 = arith.constant dense<0.000000e+00> : vector<2x13x8xf32>
    %71 = tpu.matmul %70, %57, %cst_26 {dimension_numbers = #tpu.dot_dimension_numbers<[2], [1], [1], [2], [0, 0, 0, 1, 1, 2], [0], [0]>} : vector<2x13x16xf32>, vector<2x16x8xf32>, vector<2x13x8xf32> -> vector<2x13x8xf32>
    "tpu.trace_stop"() : () -> ()
    %72 = vector.shape_cast %71 : vector<2x13x8xf32> to vector<26x8xf32>
    %c2 = arith.constant 2 : index
    %c0_27 = arith.constant 0 : index
    %c0_28 = arith.constant 0 : index
    %73 = vector.load %arg4[%c2, %c0_27, %c0_28] : memref<4x8x32xf32, #tpu.memory_space<vmem>>, vector<1x8x32xf32>
    %74 = vector.shape_cast %73 : vector<1x8x32xf32> to vector<8x32xf32>
    %cst_29 = arith.constant dense<0.000000e+00> : vector<26x32xf32>
    %75 = tpu.matmul %72, %74, %cst_29 {dimension_numbers = #tpu.dot_dimension_numbers<[1], [0], [0], [1], [0, 0, 1, 1], [], []>} : vector<26x8xf32>, vector<8x32xf32>, vector<26x32xf32> -> vector<26x32xf32>
    %76 = arith.addf %53, %75 : vector<26x32xf32>
    %77 = vector.extract_strided_slice %3 {offsets = [0, 24], sizes = [32, 8], strides = [1, 1]} : vector<32x64xf32> to vector<32x8xf32>
    %78 = vector.shape_cast %77 : vector<32x8xf32> to vector<2x16x8xf32>
    %79 = vector.extract_strided_slice %3 {offsets = [0, 56], sizes = [32, 8], strides = [1, 1]} : vector<32x64xf32> to vector<32x8xf32>
    %80 = vector.shape_cast %79 : vector<32x8xf32> to vector<2x16x8xf32>
    %81 = vector.extract_strided_slice %6 {offsets = [0, 3, 0, 0], sizes = [2, 1, 13, 8], strides = [1, 1, 1, 1]} : vector<2x4x13x8xf32> to vector<2x1x13x8xf32>
    %82 = vector.shape_cast %81 : vector<2x1x13x8xf32> to vector<2x13x8xf32>
    "tpu.trace_start"() <{level = 10 : i32, message = "bjd,bnd->bjn"}> : () -> ()
    %cst_30 = arith.constant dense<0.000000e+00> : vector<2x13x16xf32>
    %83 = tpu.matmul %82, %78, %cst_30 {dimension_numbers = #tpu.dot_dimension_numbers<[2], [2], [1], [1], [0, 0, 0, 1, 1, 1], [0], [0]>} : vector<2x13x8xf32>, vector<2x16x8xf32>, vector<2x13x16xf32> -> vector<2x13x16xf32>
    "tpu.trace_stop"() : () -> ()
    %cst_31 = arith.constant dense<0xFF800000> : vector<2x13xf32>
    %84 = vector.multi_reduction <maximumf>, %83, %cst_31 [2] : vector<2x13x16xf32> to vector<2x13xf32>
    %85 = vector.shape_cast %84 : vector<2x13xf32> to vector<2x13x1xf32>
    %86 = vector.broadcast %85 : vector<2x13x1xf32> to vector<2x13x16xf32>
    %87 = arith.subf %83, %86 : vector<2x13x16xf32>
    %88 = math.exp %87 : vector<2x13x16xf32>
    %cst_32 = arith.constant dense<0.000000e+00> : vector<2x13xf32>
    %89 = vector.multi_reduction <add>, %88, %cst_32 [2] : vector<2x13x16xf32> to vector<2x13xf32>
    %90 = vector.shape_cast %89 : vector<2x13xf32> to vector<2x13x1xf32>
    %91 = tpu.reciprocal %90 {approx = true} : vector<2x13x1xf32> -> vector<2x13x1xf32>
    %92 = vector.broadcast %91 : vector<2x13x1xf32> to vector<2x13x16xf32>
    %93 = arith.mulf %88, %92 : vector<2x13x16xf32>
    "tpu.trace_start"() <{level = 10 : i32, message = "bjn,bnd->bjd"}> : () -> ()
    %cst_33 = arith.constant dense<0.000000e+00> : vector<2x13x8xf32>
    %94 = tpu.matmul %93, %80, %cst_33 {dimension_numbers = #tpu.dot_dimension_numbers<[2], [1], [1], [2], [0, 0, 0, 1, 1, 2], [0], [0]>} : vector<2x13x16xf32>, vector<2x16x8xf32>, vector<2x13x8xf32> -> vector<2x13x8xf32>
    "tpu.trace_stop"() : () -> ()
    %95 = vector.shape_cast %94 : vector<2x13x8xf32> to vector<26x8xf32>
    %c3 = arith.constant 3 : index
    %c0_34 = arith.constant 0 : index
    %c0_35 = arith.constant 0 : index
    %96 = vector.load %arg4[%c3, %c0_34, %c0_35] : memref<4x8x32xf32, #tpu.memory_space<vmem>>, vector<1x8x32xf32>
    %97 = vector.shape_cast %96 : vector<1x8x32xf32> to vector<8x32xf32>
    %cst_36 = arith.constant dense<0.000000e+00> : vector<26x32xf32>
    %98 = tpu.matmul %95, %97, %cst_36 {dimension_numbers = #tpu.dot_dimension_numbers<[1], [0], [0], [1], [0, 0, 1, 1], [], []>} : vector<26x8xf32>, vector<8x32xf32>, vector<26x32xf32> -> vector<26x32xf32>
    %99 = arith.addf %76, %98 : vector<26x32xf32>
    %c0_37 = arith.constant 0 : index
    %c0_38 = arith.constant 0 : index
    %100 = vector.load %arg5[%c0_37, %c0_38] : memref<1x32xf32, #tpu.memory_space<vmem>>, vector<1x32xf32>
    %101 = vector.broadcast %100 : vector<1x32xf32> to vector<26x32xf32>
    %102 = arith.addf %99, %101 : vector<26x32xf32>
    %103 = vector.shape_cast %102 : vector<26x32xf32> to vector<2x13x32xf32>
    %c0_39 = arith.constant 0 : index
    %c0_40 = arith.constant 0 : index
    %c0_41 = arith.constant 0 : index
    %104 = vector.load %arg6[%c0_39, %c0_40, %c0_41] : memref<2x13x32xf32, #tpu.memory_space<vmem>>, vector<2x13x32xf32>
    tpu.vector_store %arg6[%c0_39, %c0_40, %c0_41], %103 {strides = array<i32>} : memref<2x13x32xf32, #tpu.memory_space<vmem>>, vector<2x13x32xf32>,
    return
  }
  func.func @transform_0(%arg0: i32) -> (i32, i32, i32) {
    %c0_i32 = arith.constant 0 : i32
    %c0_i32_0 = arith.constant 0 : i32
    %c0_i32_1 = arith.constant 0 : i32
    return %arg0, %c0_i32, %c0_i32_0 : i32, i32, i32
  }
  func.func @transform_1(%arg0: i32) -> (i32, i32, i32) {
    %c0_i32 = arith.constant 0 : i32
    %c0_i32_0 = arith.constant 0 : i32
    %c0_i32_1 = arith.constant 0 : i32
    %c0_i32_2 = arith.constant 0 : i32
    return %c0_i32, %c0_i32_0, %c0_i32_1 : i32, i32, i32
  }
  func.func @transform_2(%arg0: i32) -> (i32, i32) {
    %c0_i32 = arith.constant 0 : i32
    %c0_i32_0 = arith.constant 0 : i32
    %c0_i32_1 = arith.constant 0 : i32
    return %c0_i32, %c0_i32_0 : i32, i32
  }
  func.func @transform_3(%arg0: i32) -> (i32, i32, i32) {
    %c0_i32 = arith.constant 0 : i32
    %c0_i32_0 = arith.constant 0 : i32
    %c0_i32_1 = arith.constant 0 : i32
    %c0_i32_2 = arith.constant 0 : i32
    return %c0_i32, %c0_i32_0, %c0_i32_1 : i32, i32, i32
  }
  func.func @transform_4(%arg0: i32) -> (i32, i32) {
    %c0_i32 = arith.constant 0 : i32
    %c0_i32_0 = arith.constant 0 : i32
    %c0_i32_1 = arith.constant 0 : i32
    return %c0_i32, %c0_i32_0 : i32, i32
  }
  func.func @transform_5(%arg0: i32) -> (i32, i32, i32) {
    %c0_i32 = arith.constant 0 : i32
    %c0_i32_0 = arith.constant 0 : i32
    %c0_i32_1 = arith.constant 0 : i32
    return %arg0, %c0_i32, %c0_i32_0 : i32, i32, i32
  }
}

</mosaic_0001>

<bundles_post_ra>
// kernel: tpu_custom_call.1
= control target key start
LH: loop header
LB: loop body
LE: loop exit
PB: predicated region body
PF: predicated region fallthrough
CT: control target
= control target key end

     0   :  { %vm28_vm0 = vcmask 261120   ;;  %vm134_vm1 = vcmask 64512   ;;  %vm303_vm2 = vcmask 130048   ;;  %vm307_vm3 = vcmask 126976   ;;  %s4230_s11 = smov 96   ;;  %s4231_s12 = smov 120   ;;  %s4837_s2 = inlined_call_operand.vmem [shape: f32[32,64], index: 2, kind: input, shape index: {}]   ;;  %s4838_s0 = inlined_call_operand.vmem [shape: f32[2,16,32], index: 0, kind: input, shape index: {}]   ;;  %s4839_s1 = inlined_call_operand.vmem [shape: f32[4,13,8], index: 1, kind: input, shape index: {}]   ;;  %s4840_s3 = inlined_call_operand.vmem [shape: f32[4,8,32], index: 3, kind: input, shape index: {}]   ;;  %s4841_s4 = inlined_call_operand.vmem [shape: f32[1,32], index: 4, kind: input, shape index: {}]   ;;  %s4842_s5 = inlined_call_operand.vmem [shape: f32[2,13,32], index: 5, kind: output, shape index: {}]  }
   0x1   :  { %v27_v0 = vld [vmem:[%s4837_s2 + $0x18] sm:$0xff]  ;;  %v26_v1 = vld [vmem:[%s4837_s2 + $0x10] sm:$0xff]  ;;  %v20_v2 = vld [vmem:[%s4838_s0] sm:$0xff]  ;;  %s4233_s17 = smov 88   ;;  %s4234_s18 = smov 112   ;;  %vm3813_vm4 = vcmask 258048  }
   0x2   :  { %4000 = vmatprep.subr.mxu0 %v27_v0  ;;  %v25_v3 = vld [vmem:[%s4837_s2 + $0x8] sm:$0xff]  ;;  %4008 = vmatprep.mubr.msk.f32.mxu0 %vm28_vm0, %v20_v2  ;;  %v24_v4 = vld [vmem:[%s4837_s2] sm:$0xff]  ;;  %v22_v6 = vld [vmem:[%s4838_s0 + $0x10] sm:$0xff]  ;;  %v531_v2 = vlaneseq  ;;  %s4235_s27 = smov 80   ;;  %s4236_s28 = smov 104  }
   0x3   :  { %4001 = vmatpush3.msra.mxu0 %v27_v0  ;;  %v21_v5 = vld [vmem:[%s4838_s0 + $0x8] sm:$0xff]  ;;  %v23_v7 = vld [vmem:[%s4838_s0 + $0x18] sm:$0xff]  ;;  %v126_v8 = vld [vmem:[%s4839_s1] sm:$0xff]  ;;  %v4232_v0 = vmov 1966171168  }
   0x4   :  { %4002 = vmatprep.subr.mxu0 %v26_v1  ;;  %4018 = vmatprep.mubr.msk.f32.mxu1 %vm134_vm1, %v126_v8  ;;  %v127_v13 = vld [vmem:[%s4839_s1 + $0x8] sm:$0x1f]  ;;  %v128_v46 = vld [vmem:[%s4839_s1 + $0x10] sm:$0xff]  ;;  %v129_v54 = vld [vmem:[%s4839_s1 + $0x18] sm:$0x1f] }
   0x5   :  { %4003 = vmatpush3.msra.mxu0 %v26_v1  ;;  %v529_v1 = vunpack.c.l.s4 %v4232_v0 }
   0x6   :  { %4004 = vmatprep.subr.mxu0 %v25_v3 }
   0x7   :  { %4005 = vmatpush3.msra.mxu0 %v25_v3 }
   0x8   :  { %4006 = vmatprep.subr.mxu0 %v24_v4 }
   0x9   :  { %4007 = vmatpush3.msra.mxu0 %v24_v4  ;;  %v530_v4 = vunpack.c.0.s8 %v529_v1 }
   0xa   :  { %4009 = vmatmul.mubr.msk.f32.vlgmr.msra.gmra.mxu0 %vm28_vm0, %v21_v5  ;;  %v532_v5 = vshrl.u32 %v531_v2, 7 }
   0xb   :  { %4011 = vmatprep.mubr.msk.f32.mxu0 %vm28_vm0, %v22_v6 }
   0xe   :  { %4012 = vmatmul.mubr.msk.f32.gmra.mxu0 %vm28_vm0, %v23_v7 }
   0xf   :  { %4025 = vmatprep.mubr.msk.f32.mxu0 %vm134_vm1, %v126_v8 }
  0xca   :  { %v4301_v9 = vpop.f32.mrf.mxu0 }
  0xcb   :  { %4014 = vmatprep.subr.msk.mxu1 %vm134_vm1, %v4301_v9 }
  0xcc   :  { %v4305_v10 = vpop.f32.mrf.mxu0  ;;  %4015 = vmatpush3.xpose.msk.msra.mxu1 %vm134_vm1, %v4301_v9 }
  0xcd   :  { %4016 = vmatprep.subr.msk.mxu1 %vm134_vm1, %v4305_v10 }
  0xce   :  { %v4311_v11 = vpop.f32.mrf.mxu0 }
  0xcf   :  { %4021 = vmatprep.subr.msk.mxu0 %vm134_vm1, %v4311_v11 }
  0xd0   :  { %v4315_v12 = vpop.f32.mrf.mxu0  ;;  %4017 = vmatpush3.xpose.msk.msra.mxu1 %vm134_vm1, %v4305_v10  ;;  %4022 = vmatpush3.xpose.msk.msra.mxu0 %vm134_vm1, %v4311_v11 }
  0xd1   :  { %4023 = vmatprep.subr.msk.mxu0 %vm134_vm1, %v4315_v12 }
  0xd3   :  { %4019 = vmatmul.mubr.msk.f32.vlgmr.msra.gmra.mxu1 %vm134_vm1, %v127_v13 }
  0xd4   :  { %4024 = vmatpush3.xpose.msk.msra.mxu0 %vm134_vm1, %v4315_v12 }
  0xd7   :  { %4026 = vmatmul.mubr.msk.f32.vlgmr.msra.gmra.mxu0 %vm134_vm1, %v127_v13  ;;  %v4380_v13 = vsub.s32 %v530_v4, %v532_v5 }
  0xd8   :  { %4046 = vmatprep.mubr.msk.f32.mxu0 %vm134_vm1, %v128_v46 }
 0x193   :  { %v4020_v14 = vpop.f32.mrf.mxu1 }
 0x194   :  { %v308_v19 = vsel %vm307_vm3, %v4020_v14, -inf }
 0x195   :  { %v213_v15 = vpop.f32.mrf.mxu1 }
 0x196   :  { %v304_v16 = vsel %vm303_vm2, %v213_v15, -inf }
 0x197   :  { %305 = vmax.xlane.f32.xlu0 %v304_v16  ;;  %v4027_v17 = vpop.f32.mrf.mxu0 }
 0x198   :  { %v314_v21 = vsel %vm307_vm3, %v4027_v17, -inf }
 0x199   :  { %v294_v18 = vpop.f32.mrf.mxu0 }
 0x19a   :  { %v311_v20 = vsel %vm303_vm2, %v294_v18, -inf }
 0x19b   :  { %309 = vmax.xlane.f32.xlu0 %v308_v19  ;;  %312 = vmax.xlane.f32.xlu1 %v311_v20 }
 0x19f   :  { %315 = vmax.xlane.f32.xlu1 %v314_v21 }
 0x1b0   :  { %349 = vrot.lane.b32.xlu1 %v4305_v10, %s4230_s11 }
 0x1b1   :  { %351 = vrot.lane.b32.xlu0 %v4301_v9, %s4230_s11 }
 0x1b4   :  { %438 = vrot.lane.b32.xlu1 %v4311_v11, %s4230_s11 }
 0x1b5   :  { %706 = vrot.lane.b32.xlu0 %v4301_v9, %s4231_s12 }
 0x1b8   :  { %436 = vrot.lane.b32.xlu1 %v4315_v12, %s4230_s11 }
 0x1bc   :  { %795 = vrot.lane.b32.xlu1 %v4311_v11, %s4231_s12 }
 0x220   :  { %v306_v22 = vpop.xlane.xlu0 %305 }
 0x221   :  { %v317_v23 = vsub.f32 %v213_v15, %v306_v22 }
 0x223   :  { %v321_v24 = vmul.f32 1.442695, %v317_v23 }
 0x224   :  { %v310_v25 = vpop.xlane.xlu0 %309  ;;  %v313_v26 = vpop.xlane.xlu1 %312 }
 0x225   :  { %4166 = vpow2.f32 %v321_v24  ;;  %v318_v27 = vsub.f32 %v4020_v14, %v310_v25  ;;  %v319_v28 = vsub.f32 %v294_v18, %v313_v26 }
 0x227   :  { %v323_v29 = vmul.f32 1.442695, %v318_v27  ;;  %v325_v30 = vmul.f32 1.442695, %v319_v28 }
 0x228   :  { %v352_v31 = vpop.permute.xlu0 %351  ;;  %v316_v32 = vpop.xlane.xlu1 %315 }
 0x229   :  { %4168 = vpow2.f32 %v323_v29  ;;  %v320_v33 = vsub.f32 %v4027_v17, %v316_v32  ;;  %4028 = vmatprep.subr.mxu1 %v352_v31 }
 0x22a   :  { %4170 = vpow2.f32 %v325_v30  ;;  %4029 = vmatpush3.msra.mxu1 %v352_v31 }
 0x22b   :  { %v327_v34 = vmul.f32 1.442695, %v320_v33 }
 0x22c   :  { %v707_v35 = vpop.permute.xlu0 %706  ;;  %v350_v36 = vpop.permute.xlu1 %349 }
 0x22d   :  { %4172 = vpow2.f32 %v327_v34  ;;  %4030 = vmatprep.subr.mxu1 %v350_v36  ;;  %4042 = vmatprep.subr.msk.mxu0 %vm134_vm1, %v707_v35 }
 0x22e   :  { %4031 = vmatpush3.msra.mxu1 %v350_v36  ;;  %4043 = vmatpush3.xpose.msk.msra.mxu0 %vm134_vm1, %v707_v35 }
 0x230   :  { %v439_v37 = vpop.permute.xlu1 %438 }
 0x231   :  { %4035 = vmatprep.subr.mxu1 %v439_v37 }
 0x232   :  { %v4167_v38 = vpop.eup %4166 }
 0x233   :  { %v329_v39 = vsel %vm303_vm2, %v4167_v38, 0.0 }
 0x234   :  { %330 = vadd.xlane.f32.xlu0 %v329_v39  ;;  %v437_v47 = vpop.permute.xlu1 %436 }
 0x236   :  { %v4169_v40 = vpop.eup %4168 }
 0x237   :  { %v4171_v41 = vpop.eup %4170  ;;  %v332_v42 = vsel %vm307_vm3, %v4169_v40, 0.0 }
 0x238   :  { %333 = vadd.xlane.f32.xlu1 %v332_v42  ;;  %v335_v43 = vsel %vm303_vm2, %v4171_v41, 0.0  ;;  %v796_v48 = vpop.permute.xlu1 %795 }
 0x239   :  { %336 = vadd.xlane.f32.xlu0 %v335_v43 }
 0x23a   :  { %v4173_v44 = vpop.eup %4172 }
 0x23b   :  { %v338_v45 = vsel %vm307_vm3, %v4173_v44, 0.0 }
 0x23c   :  { %339 = vadd.xlane.f32.xlu1 %v338_v45 }
 0x24d   :  { %793 = vrot.lane.b32.xlu1 %v4315_v12, %s4231_s12 }
 0x24f   :  { %704 = vrot.lane.b32.xlu0 %v4305_v10, %s4231_s12 }
 0x2bd   :  { %v331_v49 = vpop.xlane.xlu0 %330 }
 0x2be   :  { %4174 = vrcp.f32 %v331_v49 }
 0x2c1   :  { %v334_v50 = vpop.xlane.xlu1 %333 }
 0x2c2   :  { %v337_v51 = vpop.xlane.xlu0 %336  ;;  %4176 = vrcp.f32 %v334_v50 }
 0x2c3   :  { %4178 = vrcp.f32 %v337_v51 }
 0x2c5   :  { %v340_v52 = vpop.xlane.xlu1 %339 }
 0x2c6   :  { %v705_v53 = vpop.permute.xlu0 %704  ;;  %4180 = vrcp.f32 %v340_v52 }
 0x2c7   :  { %4044 = vmatprep.subr.msk.mxu0 %vm134_vm1, %v705_v53 }
 0x2c8   :  { %4045 = vmatpush3.xpose.msk.msra.mxu0 %vm134_vm1, %v705_v53 }
 0x2c9   :  { %v794_v63 = vpop.permute.xlu1 %793 }
 0x2cb   :  { %v4175_v55 = vpop.eup %4174  ;;  %4047 = vmatmul.mubr.msk.f32.vlgmr.msra.gmra.mxu0 %vm134_vm1, %v129_v54 }
 0x2cc   :  { %v345_v56 = vmul.f32 %v4175_v55, %v4167_v38 }
 0x2ce   :  { %4032 = vmatprep.mubr.msk.f32.mxu1 %vm303_vm2, %v345_v56 }
 0x2cf   :  { %v4177_v57 = vpop.eup %4176 }
 0x2d0   :  { %v4179_v58 = vpop.eup %4178  ;;  %v346_v59 = vmul.f32 %v4177_v57, %v4169_v40 }
 0x2d1   :  { %v347_v60 = vmul.f32 %v4179_v58, %v4171_v41 }
 0x2d2   :  { %4033 = vmatmul.mubr.msk.f32.vlgmr.msra.gmra.mxu1 %vm303_vm2, %v346_v59 }
 0x2d3   :  { %v4181_v61 = vpop.eup %4180  ;;  %4036 = vmatpush3.msra.mxu1 %v439_v37  ;;  %4039 = vmatprep.mubr.msk.f32.mxu1 %vm303_vm2, %v347_v60 }
 0x2d4   :  { %4037 = vmatprep.subr.mxu1 %v437_v47  ;;  %v348_v62 = vmul.f32 %v4181_v61, %v4173_v44 }
 0x2d5   :  { %4038 = vmatpush3.msra.mxu1 %v437_v47 }
 0x2d6   :  { %4049 = vmatprep.subr.msk.mxu1 %vm134_vm1, %v796_v48  ;;  %4040 = vmatmul.mubr.msk.f32.vlgmr.msra.gmra.mxu1 %vm303_vm2, %v348_v62 }
 0x2d7   :  { %4050 = vmatpush3.xpose.msk.msra.mxu1 %vm134_vm1, %v796_v48  ;;  %4053 = vmatprep.mubr.msk.f32.mxu1 %vm134_vm1, %v128_v46 }
 0x2d8   :  { %4051 = vmatprep.subr.msk.mxu1 %vm134_vm1, %v794_v63 }
 0x2db   :  { %4052 = vmatpush3.xpose.msk.msra.mxu1 %vm134_vm1, %v794_v63 }
 0x2de   :  { %4054 = vmatmul.mubr.msk.f32.vlgmr.msra.gmra.mxu1 %vm134_vm1, %v129_v54 }
 0x38b   :  { %v4372_v3 = vpop.f32.mrf.mxu0 }
 0x38c   :  { %v879_v6 = vsel %vm307_vm3, %v4372_v3, -inf }
 0x38d   :  { %v4376_v7 = vpop.f32.mrf.mxu0  ;;  %880 = vmax.xlane.f32.xlu1 %v879_v6 }
 0x38e   :  { %v876_v8 = vsel %vm303_vm2, %v4376_v7, -inf }
 0x38f   :  { %877 = vmax.xlane.f32.xlu0 %v876_v8 }
 0x392   :  { %v4034_v14 = vpop.f32.mrf.mxu1 }
 0x393   :  { %v583_v15 = vrot.slane %v4034_v14, %v4380_v13  ;;  %v576_v19 = vcombine.high %v4034_v14, %v4034_v14 }
 0x394   :  { %v4383_v16 = vpop.f32.mrf.mxu1 }
 0x395   :  { %v591_v18 = vcombine.high %v583_v15, %v583_v15  ;;  %v590_v24 = vrot.slane %v576_v19, %v4380_v13  ;;  %v598_v25 = vrot.slane %v583_v15, %v4380_v13 }
 0x396   :  { %v4385_v17 = vpop.f32.mrf.mxu1 }
 0x397   :  { %v671_v20 = vrot.slane %v4385_v17, %v4380_v13  ;;  %v612_v22 = vrot.slane %v591_v18, %v4380_v13  ;;  %v605_v35 = vrot.slane %v590_v24, %v4380_v13 }
 0x398   :  { %v514_v21 = vpop.f32.mrf.mxu1 }
 0x399   :  { %v615_v23 = vcombine.high %v514_v21, %v514_v21  ;;  %v679_v26 = vcombine.high %v671_v20, %v671_v20  ;;  %v686_v27 = vrot.slane %v671_v20, %v4380_v13  ;;  %v622_v28 = vrot.slane %v514_v21, %v4380_v13 }
 0x39a   :  { %v1580_v30 = vcombine.low %v598_v25, %v612_v22  ;;  %v3859_v31 = vcombine.high %v598_v25, %v612_v22 }
 0x39b   :  { %v629_v32 = vrot.slane %v615_v23, %v4380_v13  ;;  %v630_v33 = vcombine.high %v622_v28, %v622_v28  ;;  %v4399_v36 = vrot.slane %v679_v26, %v4380_v13  ;;  %v638_v37 = vrot.slane %v622_v28, %v4380_v13 }
 0x39c   :  { %v701_v39 = vcombine.high %v686_v27, %v686_v27  ;;  %v1590_v43 = vrot.slane %v1580_v30, %v4380_v13  ;;  %v1597_v44 = vrot.slane %v3859_v31, %v4380_v13 }
 0x39d   :  { %v631_v40 = vcombine.high %v629_v32, %v629_v32  ;;  %v645_v41 = vrot.slane %v629_v32, %v4380_v13  ;;  %v652_v42 = vrot.slane %v630_v33, %v4380_v13  ;;  %v660_v45 = vcombine.high %v638_v37, %v638_v37 }
 0x39e   :  { %v4394_v29 = vpop.f32.mrf.mxu1  ;;  %v1582_v46 = vcombine.low %v605_v35, %v638_v37  ;;  %v1632_v52 = vcombine.low %v4399_v36, %v701_v39  ;;  %v1612_v56 = vcombine.low %v1590_v43, %v1597_v44 }
 0x39f   :  { %v659_v47 = vrot.slane %v631_v40, %v4380_v13  ;;  %v661_v48 = vcombine.high %v645_v41, %v645_v41  ;;  %v662_v49 = vcombine.high %v652_v42, %v652_v42  ;;  %v1583_v50 = vcombine.low %v652_v42, %v660_v45 }
 0x3a0   :  { %v867_v34 = vpop.f32.mrf.mxu1  ;;  %v885_v51 = vsel %vm307_vm3, %v4394_v29, -inf  ;;  %v1604_v57 = vrot.slane %v1582_v46, %v4380_v13  ;;  %v1660_v63 = vrot.slane %v1632_v52, %v4380_v13  ;;  %v1620_v2 = vrot.slane %v1612_v56, %v4380_v13 }
 0x3a1   :  { %v882_v38 = vsel %vm303_vm2, %v867_v34, -inf  ;;  %v663_v53 = vcombine.high %v659_v47, %v659_v47  ;;  %v1629_v54 = vcombine.low %v662_v49, %v645_v41  ;;  %v1630_v55 = vcombine.low %v659_v47, %v661_v48 }
 0x3a2   :  { %883 = vmax.xlane.f32.xlu0 %v882_v38  ;;  %v1611_v58 = vrot.slane %v1583_v50, %v4380_v13  ;;  %v534_v41 = vrot.slane %v4383_v16, %v4380_v13 }
 0x3a3   :  { %v1631_v59 = vcombine.low %v663_v53, %v686_v27  ;;  %v1639_v60 = vrot.slane %v1629_v54, %v4380_v13  ;;  %v1646_v61 = vrot.slane %v1630_v55, %v4380_v13 }
 0x3a4   :  { %v1613_v62 = vcombine.low %v1604_v57, %v1611_v58  ;;  %v542_v45 = vcombine.high %v534_v41, %v534_v41  ;;  %v550_v50 = vrot.slane %v534_v41, %v4380_v13 }
 0x3a5   :  { %v1653_v0 = vrot.slane %v1631_v59, %v4380_v13  ;;  %v1661_v1 = vcombine.low %v1639_v60, %v1646_v61  ;;  %v3849_v60 = vld [vmem:[%s4840_s3 + $0x8] sm:$0xff]  ;;  %v664_v61 = vcombine.high %v4385_v17, %v4385_v17 }
 0x3a6   :  { %886 = vmax.xlane.f32.xlu0 %v885_v51  ;;  %v1627_v4 = vrot.slane %v1613_v62, %v4380_v13  ;;  %v564_v49 = vrot.slane %v542_v45, %v4380_v13 }
 0x3a7   :  { %v1662_v5 = vcombine.low %v1653_v0, %v1660_v63  ;;  %v1669_v8 = vrot.slane %v1661_v1, %v4380_v13 }
 0x3a8   :  { %v4419_v6 = vcombine.low %v1620_v2, %v1627_v4  ;;  %v1531_v55 = vcombine.low %v550_v50, %v564_v49  ;;  %v3857_v56 = vcombine.high %v550_v50, %v564_v49 }
 0x3a9   :  { %v1676_v14 = vrot.slane %v1662_v5, %v4380_v13  ;;  %v678_v5 = vrot.slane %v664_v61, %v4380_v13 }
 0x3aa   :  { %v1541_v63 = vrot.slane %v1531_v55, %v4380_v13  ;;  %v1548_v0 = vrot.slane %v3857_v56, %v4380_v13 }
 0x3ab   :  { %v4423_v15 = vcombine.low %v1669_v8, %v1676_v14  ;;  %v702_v14 = vcombine.high %v4399_v36, %v4399_v36 }
 0x3ac   :  { %v1563_v8 = vcombine.low %v1541_v63, %v1548_v0 }
 0x416   :  { %v881_v18 = vpop.xlane.xlu1 %880 }
 0x417   :  { %v889_v19 = vsub.f32 %v4372_v3, %v881_v18 }
 0x418   :  { %v878_v20 = vpop.xlane.xlu0 %877 }
 0x419   :  { %v894_v21 = vmul.f32 1.442695, %v889_v19  ;;  %v888_v22 = vsub.f32 %v4376_v7, %v878_v20  ;;  %v703_v20 = vld [vmem:[%s4840_s3] sm:$0xff] }
 0x41b   :  { %4182 = vpow2.f32 %v894_v21  ;;  %v892_v23 = vmul.f32 1.442695, %v888_v22  ;;  %v693_v22 = vrot.slane %v678_v5, %v4380_v13 }
 0x41d   :  { %4184 = vpow2.f32 %v892_v23 }
 0x428   :  { %v4427_v24 = vpop.eup %4182 }
 0x429   :  { %v903_v25 = vsel %vm307_vm3, %v4427_v24, 0.0 }
 0x42a   :  { %v4185_v26 = vpop.eup %4184  ;;  %904 = vadd.xlane.f32.xlu1 %v903_v25  ;;  %v1678_v25 = vcombine.low %v702_v14, %v693_v22 }
 0x42b   :  { %v884_v27 = vpop.xlane.xlu0 %883  ;;  %v900_v28 = vsel %vm303_vm2, %v4185_v26, 0.0 }
 0x42c   :  { %v890_v30 = vsub.f32 %v867_v34, %v884_v27  ;;  %901 = vadd.xlane.f32.xlu0 %v900_v28  ;;  %v527_v34 = vcombine.high %v4383_v16, %v4383_v16  ;;  %v1685_v28 = vrot.slane %v1678_v25, %v4380_v13 }
 0x42e   :  { %v896_v3 = vmul.f32 1.442695, %v890_v30  ;;  %v541_v40 = vrot.slane %v527_v34, %v4380_v13 }
 0x42f   :  { %v887_v31 = vpop.xlane.xlu0 %886 }
 0x430   :  { %4186 = vpow2.f32 %v896_v3  ;;  %v891_v7 = vsub.f32 %v4394_v29, %v887_v31  ;;  %v543_v43 = vcombine.high %v541_v40, %v541_v40  ;;  %v557_v48 = vrot.slane %v541_v40, %v4380_v13  ;;  %v4500_v31 = vld [vmem:[%s4839_s1 + $0x20] sm:$0xff] }
 0x431   :  { %v1692_v3 = vrot.slane %v1685_v28, %v4380_v13 }
 0x432   :  { %v898_v32 = vmul.f32 1.442695, %v891_v7  ;;  %v571_v46 = vrot.slane %v543_v43, %v4380_v13 }
 0x434   :  { %4188 = vpow2.f32 %v898_v32  ;;  %v1533_v51 = vcombine.low %v557_v48, %v571_v46  ;;  %v3858_v52 = vcombine.high %v557_v48, %v571_v46 }
 0x436   :  { %v1555_v57 = vrot.slane %v1533_v51, %v4380_v13  ;;  %v1562_v58 = vrot.slane %v3858_v52, %v4380_v13 }
 0x438   :  { %v1564_v4 = vcombine.low %v1555_v57, %v1562_v58 }
 0x43a   :  { %v1578_v21 = vrot.slane %v1564_v4, %v4380_v13 }
 0x43d   :  { %v4433_v33 = vpop.eup %4186 }
 0x43e   :  { %v906_v35 = vsel %vm303_vm2, %v4433_v33, 0.0 }
 0x43f   :  { %907 = vadd.xlane.f32.xlu0 %v906_v35 }
 0x441   :  { %v4437_v37 = vpop.eup %4188 }
 0x442   :  { %v909_v38 = vsel %vm307_vm3, %v4437_v37, 0.0 }
 0x443   :  { %910 = vadd.xlane.f32.xlu1 %v909_v38 }
 0x454   :  { %920 = vrot.lane.b32.xlu1 %v4305_v10, %s4233_s17 }
 0x455   :  { %922 = vrot.lane.b32.xlu0 %v4301_v9, %s4233_s17 }
 0x458   :  { %1009 = vrot.lane.b32.xlu1 %v4311_v11, %s4233_s17 }
 0x459   :  { %1788 = vrot.lane.b32.xlu0 %v4301_v9, %s4234_s18 }
 0x45c   :  { %1007 = vrot.lane.b32.xlu1 %v4315_v12, %s4233_s17 }
 0x45d   :  { %1786 = vrot.lane.b32.xlu0 %v4305_v10, %s4234_s18 }
 0x460   :  { %1877 = vrot.lane.b32.xlu1 %v4311_v11, %s4234_s18 }
 0x464   :  { %1875 = vrot.lane.b32.xlu1 %v4315_v12, %s4234_s18 }
 0x4b3   :  { %v905_v39 = vpop.xlane.xlu1 %904 }
 0x4b5   :  { %v902_v29 = vpop.xlane.xlu0 %901 }
 0x4b6   :  { %4190 = vrcp.f32 %v902_v29 }
 0x4b7   :  { %4192 = vrcp.f32 %v905_v39 }
 0x4c3   :  { %v4191_v42 = vpop.eup %4190 }
 0x4c4   :  { %v916_v44 = vmul.f32 %v4191_v42, %v4185_v26  ;;  %v4193_v54 = vpop.eup %4192 }
 0x4c5   :  { %v917_v62 = vmul.f32 %v4193_v54, %v4427_v24  ;;  %v1571_v24 = vrot.slane %v1563_v8, %v4380_v13 }
 0x4c6   :  { %4060 = vmatprep.mubr.msk.f32.mxu0 %vm303_vm2, %v916_v44 }
 0x4c7   :  { %v1579_v27 = vcombine.low %v1571_v24, %v1578_v21 }
 0x4c8   :  { %v908_v47 = vpop.xlane.xlu0 %907 }
 0x4c9   :  { %4194 = vrcp.f32 %v908_v47 }
 0x4cc   :  { %v923_v53 = vpop.permute.xlu0 %922  ;;  %v911_v16 = vpop.xlane.xlu1 %910 }
 0x4cd   :  { %4196 = vrcp.f32 %v911_v16  ;;  %4056 = vmatprep.subr.mxu0 %v923_v53 }
 0x4ce   :  { %4057 = vmatpush3.msra.mxu0 %v923_v53 }
 0x4d0   :  { %v921_v59 = vpop.permute.xlu1 %920  ;;  %v4470_v1 = vpop.permute.xlu0 %1788 }
 0x4d1   :  { %4058 = vmatprep.subr.mxu0 %v921_v59 }
 0x4d2   :  { %4059 = vmatpush3.msra.mxu0 %v921_v59 }
 0x4d3   :  { %4061 = vmatmul.mubr.msk.f32.vlgmr.msra.gmra.mxu0 %vm303_vm2, %v917_v62  ;;  %4070 = vmatprep.subr.mxu0 %v3849_v60 }
 0x4d4   :  { %4071 = vmatpush3.msra.mxu0 %v3849_v60  ;;  %v1010_v2 = vpop.permute.xlu1 %1009 }
 0x4d5   :  { %4063 = vmatprep.subr.mxu1 %v1010_v2  ;;  %4086 = vmatprep.subr.msk.mxu0 %vm134_vm1, %v4470_v1 }
 0x4d6   :  { %v4195_v17 = vpop.eup %4194  ;;  %4064 = vmatpush3.msra.mxu1 %v1010_v2 }
 0x4d7   :  { %v918_v18 = vmul.f32 %v4195_v17, %v4433_v33 }
 0x4d8   :  { %v1008_v19 = vpop.permute.xlu1 %1007 }
 0x4d9   :  { %4065 = vmatprep.subr.mxu1 %v1008_v19  ;;  %4067 = vmatprep.mubr.msk.f32.mxu1 %vm303_vm2, %v918_v18 }
 0x4da   :  { %v4197_v23 = vpop.eup %4196  ;;  %4066 = vmatpush3.msra.mxu1 %v1008_v19 }
 0x4db   :  { %4078 = vmatprep.subr.mxu1 %v703_v20  ;;  %v919_v36 = vmul.f32 %v4197_v23, %v4437_v37 }
 0x4dc   :  { %v1878_v26 = vpop.permute.xlu1 %1877 }
 0x4dd   :  { %4068 = vmatmul.mubr.msk.f32.vlgmr.msra.gmra.mxu1 %vm303_vm2, %v919_v36 }
 0x4de   :  { %4079 = vmatpush3.msra.mxu1 %v703_v20  ;;  %4080 = vmatprep.mubr.msk.f32.mxu1 %vm134_vm1, %v1579_v27 }
 0x4df   :  { %4093 = vmatprep.subr.msk.mxu1 %vm134_vm1, %v1878_v26 }
 0x4e0   :  { %v1876_v30 = vpop.permute.xlu1 %1875 }
 0x4e1   :  { %4081 = vmatmul.mubr.msk.f32.vlgmr.msra.gmra.mxu1 %vm134_vm1, %v4419_v6  ;;  %v4509_v6 = vld [vmem:[%s4839_s1 + $0x28] sm:$0x1f] }
 0x4e2   :  { %4094 = vmatpush3.xpose.msk.msra.mxu1 %vm134_vm1, %v1878_v26  ;;  %4083 = vmatprep.mubr.msk.f32.mxu1 %vm134_vm1, %v4423_v15 }
 0x4e3   :  { %4095 = vmatprep.subr.msk.mxu1 %vm134_vm1, %v1876_v30 }
 0x4e5   :  { %4084 = vmatmul.mubr.msk.f32.gmra.mxu1 %vm134_vm1, %v1692_v3 }
 0x4e6   :  { %4096 = vmatpush3.xpose.msk.msra.mxu1 %vm134_vm1, %v1876_v30  ;;  %4097 = vmatprep.mubr.msk.f32.mxu1 %vm134_vm1, %v4500_v31 }
 0x4e9   :  { %4098 = vmatmul.mubr.msk.f32.vlgmr.msra.gmra.mxu1 %vm134_vm1, %v4509_v6 }
 0x593   :  { %v4062_v15 = vpop.f32.mrf.mxu0 }
 0x594   :  { %v1154_v7 = vrot.slane %v4062_v15, %v4380_v13  ;;  %v1147_v34 = vcombine.high %v4062_v15, %v4062_v15 }
 0x595   :  { %v998_v32 = vpop.f32.mrf.mxu0 }
 0x596   :  { %v1162_v33 = vcombine.high %v1154_v7, %v1154_v7  ;;  %v1098_v35 = vcombine.high %v998_v32, %v998_v32  ;;  %v1105_v37 = vrot.slane %v998_v32, %v4380_v13  ;;  %v1169_v43 = vrot.slane %v1154_v7, %v4380_v13 }
 0x597   :  { %v1161_v49 = vrot.slane %v1147_v34, %v4380_v13 }
 0x598   :  { %v1112_v38 = vrot.slane %v1098_v35, %v4380_v13  ;;  %v1113_v29 = vcombine.high %v1105_v37, %v1105_v37  ;;  %v1183_v39 = vrot.slane %v1162_v33, %v4380_v13  ;;  %v1121_v41 = vrot.slane %v1105_v37, %v4380_v13 }
 0x599   :  { %v1176_v2 = vrot.slane %v1161_v49, %v4380_v13 }
 0x59a   :  { %v1114_v40 = vcombine.high %v1112_v38, %v1112_v38  ;;  %v1135_v42 = vrot.slane %v1113_v29, %v4380_v13  ;;  %v1128_v44 = vrot.slane %v1112_v38, %v4380_v13  ;;  %v1325_v50 = vcombine.low %v1169_v43, %v1183_v39 }
 0x59b   :  { %v3852_v53 = vcombine.high %v1169_v43, %v1183_v39 }
 0x59c   :  { %v1142_v45 = vrot.slane %v1114_v40, %v4380_v13  ;;  %v1276_v46 = vcombine.low %v1121_v41, %v1135_v42  ;;  %v3850_v47 = vcombine.high %v1121_v41, %v1135_v42  ;;  %v1335_v17 = vrot.slane %v1325_v50, %v4380_v13 }
 0x59d   :  { %v4069_v48 = vpop.f32.mrf.mxu1  ;;  %v1342_v8 = vrot.slane %v3852_v53, %v4380_v13 }
 0x59e   :  { %v1278_v51 = vcombine.low %v1128_v44, %v1142_v45  ;;  %v3851_v52 = vcombine.high %v1128_v44, %v1142_v45  ;;  %v1286_v16 = vrot.slane %v1276_v46, %v4380_v13  ;;  %v1293_v54 = vrot.slane %v3850_v47, %v4380_v13 }
 0x59f   :  { %v1242_v55 = vrot.slane %v4069_v48, %v4380_v13  ;;  %v1085_v56 = vpop.f32.mrf.mxu1  ;;  %v1235_v59 = vcombine.high %v4069_v48, %v4069_v48  ;;  %v1357_v29 = vcombine.low %v1335_v17, %v1342_v8 }
 0x5a0   :  { %v1300_v57 = vrot.slane %v1278_v51, %v4380_v13  ;;  %v1307_v58 = vrot.slane %v3851_v52, %v4380_v13  ;;  %v1308_v60 = vcombine.low %v1286_v16, %v1293_v54  ;;  %v1186_v63 = vcombine.high %v1085_v56, %v1085_v56 }
 0x5a1   :  { %v1250_v61 = vcombine.high %v1242_v55, %v1242_v55  ;;  %v1257_v62 = vrot.slane %v1242_v55, %v4380_v13  ;;  %v4529_v0 = vpop.f32.mrf.mxu1  ;;  %v1193_v4 = vrot.slane %v1085_v56, %v4380_v13  ;;  %v1249_v24 = vrot.slane %v1235_v59, %v4380_v13 }
 0x5a2   :  { %v1309_v5 = vcombine.low %v1300_v57, %v1307_v58  ;;  %v1200_v18 = vrot.slane %v1186_v63, %v4380_v13  ;;  %v1316_v22 = vrot.slane %v1308_v60, %v4380_v13  ;;  %v1365_v54 = vrot.slane %v1357_v29, %v4380_v13 }
 0x5a3   :  { %v1271_v14 = vrot.slane %v1250_v61, %v4380_v13  ;;  %v4537_v19 = vpop.f32.mrf.mxu1  ;;  %v1201_v20 = vcombine.high %v1193_v4, %v1193_v4  ;;  %v1209_v21 = vrot.slane %v1193_v4, %v4380_v13  ;;  %v1272_v25 = vcombine.high %v1257_v62, %v1257_v62 }
 0x5a4   :  { %v1323_v23 = vrot.slane %v1309_v5, %v4380_v13  ;;  %v1202_v36 = vcombine.high %v1200_v18, %v1200_v18  ;;  %v1216_v26 = vrot.slane %v1200_v18, %v4380_v13  ;;  %v1264_v42 = vrot.slane %v1249_v24, %v4380_v13 }
 0x5a5   :  { %v4544_v27 = vpop.f32.mrf.mxu1  ;;  %v1223_v28 = vrot.slane %v1201_v20, %v4380_v13  ;;  %v1231_v30 = vcombine.high %v1209_v21, %v1209_v21  ;;  %v1327_v3 = vcombine.low %v1176_v2, %v1209_v21  ;;  %v1273_v35 = vcombine.high %v1271_v14, %v1271_v14 }
 0x5a6   :  { %v1324_v15 = vcombine.low %v1316_v22, %v1323_v23  ;;  %v1230_v7 = vrot.slane %v1202_v36, %v4380_v13  ;;  %v1232_v32 = vcombine.high %v1216_v26, %v1216_v26  ;;  %v1377_v34 = vcombine.low %v1271_v14, %v1272_v25 }
 0x5a7   :  { %v4548_v33 = vpop.f32.mrf.mxu1  ;;  %v1233_v37 = vcombine.high %v1223_v28, %v1223_v28  ;;  %v1328_v38 = vcombine.low %v1223_v28, %v1231_v30  ;;  %v1349_v43 = vrot.slane %v1327_v3, %v4380_v13  ;;  %v1423_v49 = vcombine.low %v1273_v35, %v1264_v42 }
 0x5a8   :  { %4072 = vmatprep.mubr.msk.f32.mxu0 %vm134_vm1, %v1324_v15  ;;  %v1234_v39 = vcombine.high %v1230_v7, %v1230_v7  ;;  %v1375_v40 = vcombine.low %v1230_v7, %v1232_v32  ;;  %v1405_v53 = vrot.slane %v1377_v34, %v4380_v13 }
 0x5a9   :  { %v4099_v41 = vpop.f32.mrf.mxu1  ;;  %v1356_v44 = vrot.slane %v1328_v38, %v4380_v13  ;;  %v1374_v45 = vcombine.low %v1233_v37, %v1216_v26  ;;  %v1430_v59 = vrot.slane %v1423_v49, %v4380_v13 }
 0x5aa   :  { %v1376_v46 = vcombine.low %v1234_v39, %v1257_v62  ;;  %v1391_v47 = vrot.slane %v1375_v40, %v4380_v13  ;;  %v1787_v62 = vpop.permute.xlu0 %1786  ;;  %v1967_v23 = vsel %vm307_vm3, %v4099_v41, -inf }
 0x5ab   :  { %v1949_v48 = vpop.f32.mrf.mxu1  ;;  %v1358_v50 = vcombine.low %v1349_v43, %v1356_v44  ;;  %v1384_v51 = vrot.slane %v1374_v45, %v4380_v13  ;;  %v1437_v2 = vrot.slane %v1430_v59, %v4380_v13 }
 0x5ac   :  { %v1964_v52 = vsel %vm303_vm2, %v1949_v48, -inf  ;;  %v1398_v16 = vrot.slane %v1376_v46, %v4380_v13 }
 0x5ad   :  { %1965 = vmax.xlane.f32.xlu0 %v1964_v52  ;;  %v1372_v55 = vrot.slane %v1358_v50, %v4380_v13  ;;  %v1406_v56 = vcombine.low %v1384_v51, %v1391_v47 }
 0x5ae   :  { %v1407_v57 = vcombine.low %v1398_v16, %v1405_v53 }
 0x5af   :  { %v1373_v58 = vcombine.low %v1365_v54, %v1372_v55  ;;  %v1414_v60 = vrot.slane %v1406_v56, %v4380_v13  ;;  %v4607_v55 = vld [vmem:[%s4839_s1 + $0x30] sm:$0xff] }
 0x5b0   :  { %v1421_v61 = vrot.slane %v1407_v57, %v4380_v13 }
 0x5b1   :  { %4073 = vmatmul.mubr.msk.f32.vlgmr.msra.gmra.mxu0 %vm134_vm1, %v1373_v58 }
 0x5b2   :  { %4087 = vmatpush3.xpose.msk.msra.mxu0 %vm134_vm1, %v4470_v1  ;;  %v1422_v63 = vcombine.low %v1414_v60, %v1421_v61  ;;  %v4624_v60 = vld [vmem:[%s4839_s1 + $0x38] sm:$0x1f]  ;;  %s4237_s1 = smov 72  }
 0x5b3   :  { %4088 = vmatprep.subr.msk.mxu0 %vm134_vm1, %v1787_v62 }
 0x5b4   :  { %4075 = vmatprep.mubr.msk.f32.mxu0 %vm134_vm1, %v1422_v63 }
 0x5b5   :  { %4076 = vmatmul.mubr.msk.f32.gmra.mxu0 %vm134_vm1, %v1437_v2 }
 0x5b6   :  { %4089 = vmatpush3.xpose.msk.msra.mxu0 %vm134_vm1, %v1787_v62  ;;  %4090 = vmatprep.mubr.msk.f32.mxu0 %vm134_vm1, %v4500_v31 }
 0x5b9   :  { %4091 = vmatmul.mubr.msk.f32.vlgmr.msra.gmra.mxu0 %vm134_vm1, %v4509_v6 }
 0x636   :  { %v1966_v4 = vpop.xlane.xlu0 %1965 }
 0x637   :  { %v1972_v5 = vsub.f32 %v1949_v48, %v1966_v4  ;;  %v3876_v48 = vld [vmem:[%s4840_s3 + $0x10] sm:$0xff] }
 0x639   :  { %v1978_v1 = vmul.f32 1.442695, %v1972_v5 }
 0x63b   :  { %4198 = vpow2.f32 %v1978_v1 }
 0x648   :  { %v4199_v6 = vpop.eup %4198 }
 0x649   :  { %v1988_v24 = vsel %vm303_vm2, %v4199_v6, 0.0 }
 0x671   :  { %v4576_v17 = vpop.f32.mrf.mxu0 }
 0x673   :  { %v4578_v8 = vpop.f32.mrf.mxu0 }
 0x675   :  { %v4580_v14 = vpop.f32.mrf.mxu0 }
 0x677   :  { %v4582_v18 = vpop.f32.mrf.mxu0 }
 0x679   :  { %v4092_v20 = vpop.f32.mrf.mxu0 }
 0x67a   :  { %v1961_v21 = vsel %vm307_vm3, %v4092_v20, -inf }
 0x67b   :  { %1962 = vmax.xlane.f32.xlu1 %v1961_v21  ;;  %v1866_v31 = vpop.f32.mrf.mxu0 }
 0x67c   :  { %v1958_v22 = vsel %vm303_vm2, %v1866_v31, -inf }
 0x67d   :  { %1959 = vmax.xlane.f32.xlu0 %v1958_v22 }
 0x681   :  { %1968 = vmax.xlane.f32.xlu0 %v1967_v23 }
 0x685   :  { %1989 = vadd.xlane.f32.xlu0 %v1988_v24 }
 0x704   :  { %v1963_v25 = vpop.xlane.xlu1 %1962 }
 0x705   :  { %v1971_v28 = vsub.f32 %v4092_v20, %v1963_v25 }
 0x706   :  { %v1960_v36 = vpop.xlane.xlu0 %1959 }
 0x707   :  { %v1970_v26 = vsub.f32 %v1866_v31, %v1960_v36  ;;  %v1976_v7 = vmul.f32 1.442695, %v1971_v28 }
 0x709   :  { %v1974_v30 = vmul.f32 1.442695, %v1970_v26 }
 0x70a   :  { %v1969_v3 = vpop.xlane.xlu0 %1968 }
 0x70b   :  { %4200 = vpow2.f32 %v1974_v30  ;;  %v1973_v15 = vsub.f32 %v4099_v41, %v1969_v3 }
 0x70d   :  { %v1980_v32 = vmul.f32 1.442695, %v1973_v15 }
 0x70e   :  { %v1990_v35 = vpop.xlane.xlu0 %1989 }
 0x70f   :  { %4202 = vpow2.f32 %v1980_v32 }
 0x710   :  { %4204 = vrcp.f32 %v1990_v35 }
 0x711   :  { %4206 = vpow2.f32 %v1976_v7 }
 0x718   :  { %v4201_v37 = vpop.eup %4200 }
 0x719   :  { %v1982_v38 = vsel %vm303_vm2, %v4201_v37, 0.0 }
 0x71a   :  { %1983 = vadd.xlane.f32.xlu0 %v1982_v38 }
 0x71c   :  { %v4203_v29 = vpop.eup %4202 }
 0x71d   :  { %v4205_v34 = vpop.eup %4204  ;;  %v1991_v39 = vsel %vm307_vm3, %v4203_v29, 0.0 }
 0x71e   :  { %v4207_v40 = vpop.eup %4206  ;;  %1992 = vadd.xlane.f32.xlu1 %v1991_v39  ;;  %v2000_v42 = vmul.f32 %v4205_v34, %v4199_v6 }
 0x71f   :  { %v1985_v41 = vsel %vm307_vm3, %v4207_v40, 0.0 }
 0x720   :  { %4111 = vmatprep.mubr.msk.f32.mxu1 %vm303_vm2, %v2000_v42 }
 0x722   :  { %1986 = vadd.xlane.f32.xlu1 %v1985_v41 }
 0x730   :  { %2004 = vrot.lane.b32.xlu0 %v4301_v9, %s4235_s27 }
 0x733   :  { %2002 = vrot.lane.b32.xlu1 %v4305_v10, %s4235_s27 }
 0x734   :  { %2619 = vrot.lane.b32.xlu0 %v4301_v9, %s4236_s28 }
 0x737   :  { %2091 = vrot.lane.b32.xlu1 %v4311_v11, %s4235_s27 }
 0x738   :  { %2617 = vrot.lane.b32.xlu0 %v4305_v10, %s4236_s28 }
 0x73b   :  { %2089 = vrot.lane.b32.xlu1 %v4315_v12, %s4235_s27 }
 0x73f   :  { %2708 = vrot.lane.b32.xlu1 %v4311_v11, %s4236_s28 }
 0x743   :  { %2706 = vrot.lane.b32.xlu1 %v4315_v12, %s4236_s28 }
 0x7a3   :  { %v1984_v43 = vpop.xlane.xlu0 %1983 }
 0x7a4   :  { %4208 = vrcp.f32 %v1984_v43 }
 0x7a7   :  { %v2005_v44 = vpop.permute.xlu0 %2004  ;;  %v1993_v45 = vpop.xlane.xlu1 %1992 }
 0x7a8   :  { %4210 = vrcp.f32 %v1993_v45  ;;  %4100 = vmatprep.subr.mxu0 %v2005_v44 }
 0x7a9   :  { %4101 = vmatpush3.msra.mxu0 %v2005_v44 }
 0x7ab   :  { %v1987_v46 = vpop.xlane.xlu1 %1986  ;;  %v2620_v53 = vpop.permute.xlu0 %2619 }
 0x7ac   :  { %4212 = vrcp.f32 %v1987_v46 }
 0x7af   :  { %v2003_v47 = vpop.permute.xlu1 %2002  ;;  %v2618_v58 = vpop.permute.xlu0 %2617 }
 0x7b0   :  { %4102 = vmatprep.subr.mxu0 %v2003_v47 }
 0x7b1   :  { %v4209_v49 = vpop.eup %4208  ;;  %4103 = vmatpush3.msra.mxu0 %v2003_v47 }
 0x7b2   :  { %v1998_v50 = vmul.f32 %v4209_v49, %v4201_v37  ;;  %4114 = vmatprep.subr.mxu0 %v3876_v48 }
 0x7b3   :  { %v2092_v51 = vpop.permute.xlu1 %2091 }
 0x7b4   :  { %4104 = vmatprep.mubr.msk.f32.mxu0 %vm303_vm2, %v1998_v50  ;;  %4107 = vmatprep.subr.mxu1 %v2092_v51 }
 0x7b5   :  { %v4211_v52 = vpop.eup %4210  ;;  %4108 = vmatpush3.msra.mxu1 %v2092_v51 }
 0x7b6   :  { %v2001_v54 = vmul.f32 %v4211_v52, %v4203_v29 }
 0x7b7   :  { %v2090_v16 = vpop.permute.xlu1 %2089 }
 0x7b8   :  { %4109 = vmatprep.subr.mxu1 %v2090_v16 }
 0x7b9   :  { %v4213_v56 = vpop.eup %4212  ;;  %4110 = vmatpush3.msra.mxu1 %v2090_v16 }
 0x7ba   :  { %4112 = vmatmul.mubr.msk.f32.vlgmr.msra.gmra.mxu1 %vm303_vm2, %v2001_v54  ;;  %4122 = vmatprep.subr.msk.mxu1 %vm134_vm1, %v2620_v53  ;;  %v1999_v57 = vmul.f32 %v4213_v56, %v4207_v40 }
 0x7bb   :  { %4123 = vmatpush3.xpose.msk.msra.mxu1 %vm134_vm1, %v2620_v53  ;;  %v4612_v59 = vpop.permute.xlu1 %2708  ;;  %4126 = vmatprep.mubr.msk.f32.mxu1 %vm134_vm1, %v4607_v55 }
 0x7bc   :  { %4105 = vmatmul.mubr.msk.f32.vlgmr.msra.gmra.mxu0 %vm303_vm2, %v1999_v57  ;;  %4124 = vmatprep.subr.msk.mxu1 %vm134_vm1, %v2618_v58 }
 0x7bd   :  { %4115 = vmatpush3.msra.mxu0 %v3876_v48 }
 0x7be   :  { %4129 = vmatprep.subr.msk.mxu0 %vm134_vm1, %v4612_v59 }
 0x7bf   :  { %4125 = vmatpush3.xpose.msk.msra.mxu1 %vm134_vm1, %v2618_v58 }
 0x7c2   :  { %4127 = vmatmul.mubr.msk.f32.vlgmr.msra.gmra.mxu1 %vm134_vm1, %v4624_v60 }
 0x87a   :  { %v4113_v61 = vpop.f32.mrf.mxu1 }
 0x87b   :  { %v2324_v62 = vrot.slane %v4113_v61, %v4380_v13  ;;  %v2317_v34 = vcombine.high %v4113_v61, %v4113_v61 }
 0x87c   :  { %v4106_v63 = vpop.f32.mrf.mxu0  ;;  %v2167_v2 = vpop.f32.mrf.mxu1 }
 0x87d   :  { %v2229_v4 = vcombine.high %v4106_v63, %v4106_v63  ;;  %v2236_v5 = vrot.slane %v4106_v63, %v4380_v13  ;;  %v2268_v1 = vcombine.high %v2167_v2, %v2167_v2  ;;  %v2275_v20 = vrot.slane %v2167_v2, %v4380_v13 }
 0x87e   :  { %v2332_v21 = vcombine.high %v2324_v62, %v2324_v62  ;;  %v2339_v31 = vrot.slane %v2324_v62, %v4380_v13  ;;  %v2080_v15 = vpop.f32.mrf.mxu0  ;;  %v2331_v16 = vrot.slane %v2317_v34, %v4380_v13 }
 0x87f   :  { %v2243_v22 = vrot.slane %v2229_v4, %v4380_v13  ;;  %v2244_v6 = vcombine.high %v2236_v5, %v2236_v5  ;;  %v2282_v23 = vrot.slane %v2268_v1, %v4380_v13  ;;  %v2283_v24 = vcombine.high %v2275_v20, %v2275_v20 }
 0x880   :  { %v2291_v36 = vrot.slane %v2275_v20, %v4380_v13  ;;  %v2353_v7 = vrot.slane %v2332_v21, %v4380_v13  ;;  %v2354_v32 = vcombine.high %v2339_v31, %v2339_v31  ;;  %v2251_v37 = vrot.slane %v2236_v5, %v4380_v13 }
 0x881   :  { %v2258_v25 = vrot.slane %v2243_v22, %v4380_v13  ;;  %v2265_v26 = vrot.slane %v2244_v6, %v4380_v13  ;;  %v2284_v28 = vcombine.high %v2282_v23, %v2282_v23  ;;  %v2298_v30 = vrot.slane %v2282_v23, %v4380_v13 }
 0x882   :  { %v2305_v3 = vrot.slane %v2283_v24, %v4380_v13  ;;  %v2313_v35 = vcombine.high %v2291_v36, %v2291_v36  ;;  %v2180_v42 = vcombine.high %v2080_v15, %v2080_v15  ;;  %v4642_v41 = vpop.f32.mrf.mxu1  ;;  %v2459_v47 = vcombine.low %v2353_v7, %v2354_v32 }
 0x883   :  { %v2312_v38 = vrot.slane %v2284_v28, %v4380_v13  ;;  %v2314_v29 = vcombine.high %v2298_v30, %v2298_v30  ;;  %v2409_v40 = vcombine.low %v2258_v25, %v2291_v36  ;;  %v2407_v43 = vcombine.low %v2251_v37, %v2265_v26 }
 0x884   :  { %v2315_v39 = vcombine.high %v2305_v3, %v2305_v3  ;;  %v3879_v44 = vcombine.high %v2251_v37, %v2265_v26  ;;  %v2410_v46 = vcombine.low %v2305_v3, %v2313_v35  ;;  %v2187_v48 = vrot.slane %v2080_v15, %v4380_v13  ;;  %v2697_v58 = vpop.f32.mrf.mxu1 }
 0x885   :  { %v2316_v45 = vcombine.high %v2312_v38, %v2312_v38  ;;  %v2194_v49 = vrot.slane %v2180_v42, %v4380_v13  ;;  %v2457_v51 = vcombine.low %v2312_v38, %v2314_v29  ;;  %v2792_v53 = vsel %vm307_vm3, %v4642_v41, -inf }
 0x886   :  { %v2456_v50 = vcombine.low %v2315_v39, %v2298_v30  ;;  %v2431_v54 = vrot.slane %v2409_v40, %v4380_v13  ;;  %v2195_v56 = vcombine.high %v2187_v48, %v2187_v48  ;;  %2793 = vmax.xlane.f32.xlu1 %v2792_v53  ;;  %v2417_v61 = vrot.slane %v2407_v43, %v4380_v13 }
 0x887   :  { %v2458_v52 = vcombine.low %v2316_v45, %v2339_v31  ;;  %v2196_v57 = vcombine.high %v2194_v49, %v2194_v49  ;;  %v2424_v62 = vrot.slane %v3879_v44, %v4380_v13  ;;  %v2438_v63 = vrot.slane %v2410_v46, %v4380_v13 }
 0x888   :  { %v2203_v4 = vrot.slane %v2187_v48, %v4380_v13  ;;  %v2210_v5 = vrot.slane %v2194_v49, %v4380_v13  ;;  %v2217_v1 = vrot.slane %v2195_v56, %v4380_v13  ;;  %v2487_v21 = vrot.slane %v2459_v47, %v4380_v13 }
 0x889   :  { %v2480_v2 = vrot.slane %v2458_v52, %v4380_v13  ;;  %v2224_v20 = vrot.slane %v2196_v57, %v4380_v13  ;;  %v2466_v31 = vrot.slane %v2456_v50, %v4380_v13  ;;  %v2473_v22 = vrot.slane %v2457_v51, %v4380_v13  ;;  %v2707_v51 = vpop.permute.xlu1 %2706 }
 0x88a   :  { %v2789_v6 = vsel %vm303_vm2, %v2697_v58, -inf  ;;  %v2358_v23 = vcombine.low %v2203_v4, %v2217_v1  ;;  %v3877_v24 = vcombine.high %v2203_v4, %v2217_v1  ;;  %v2355_v26 = vcombine.high %v2353_v7, %v2353_v7 }
 0x88b   :  { %v2360_v25 = vcombine.low %v2210_v5, %v2224_v20  ;;  %v3878_v36 = vcombine.high %v2210_v5, %v2224_v20  ;;  %2790 = vmax.xlane.f32.xlu0 %v2789_v6  ;;  %v2439_v28 = vcombine.low %v2417_v61, %v2424_v62  ;;  %v2440_v30 = vcombine.low %v2431_v54, %v2438_v63 }
 0x88c   :  { %v2489_v3 = vcombine.low %v2480_v2, %v2487_v21  ;;  %v2368_v15 = vrot.slane %v2358_v23, %v4380_v13  ;;  %v2375_v32 = vrot.slane %v3877_v24, %v4380_v13  ;;  %v2346_v38 = vrot.slane %v2331_v16, %v4380_v13 }
 0x88d   :  { %v2382_v35 = vrot.slane %v2360_v25, %v4380_v13  ;;  %v2389_v37 = vrot.slane %v3878_v36, %v4380_v13  ;;  %v2488_v39 = vcombine.low %v2466_v31, %v2473_v22  ;;  %v2447_v42 = vrot.slane %v2439_v28, %v4380_v13 }
 0x88e   :  { %v2390_v29 = vcombine.low %v2368_v15, %v2375_v32  ;;  %v2505_v40 = vcombine.low %v2355_v26, %v2346_v38  ;;  %v2454_v7 = vrot.slane %v2440_v30, %v4380_v13  ;;  %v2503_v45 = vrot.slane %v2489_v3, %v4380_v13 }
 0x88f   :  { %v2391_v34 = vcombine.low %v2382_v35, %v2389_v37  ;;  %v2496_v47 = vrot.slane %v2488_v39, %v4380_v13  ;;  %v1783_v4 = vadd.f32 %v4544_v27, %v4580_v14 }
 0x890   :  { %v2398_v43 = vrot.slane %v2390_v29, %v4380_v13  ;;  %v2455_v48 = vcombine.low %v2447_v42, %v2454_v7  ;;  %v2512_v49 = vrot.slane %v2505_v40, %v4380_v13  ;;  %v3896_v7 = vld [vmem:[%s4840_s3 + $0x18] sm:$0xff] }
 0x891   :  { %v2405_v44 = vrot.slane %v2391_v34, %v4380_v13  ;;  %v2504_v50 = vcombine.low %v2496_v47, %v2503_v45 }
 0x892   :  { %v2519_v52 = vrot.slane %v2512_v49, %v4380_v13 }
 0x893   :  { %v2406_v46 = vcombine.low %v2398_v43, %v2405_v44 }
 0x895   :  { %4116 = vmatprep.mubr.msk.f32.mxu0 %vm134_vm1, %v2406_v46 }
 0x896   :  { %4117 = vmatmul.mubr.msk.f32.vlgmr.msra.gmra.mxu0 %vm134_vm1, %v2455_v48 }
 0x897   :  { %4130 = vmatpush3.xpose.msk.msra.mxu0 %vm134_vm1, %v4612_v59  ;;  %4119 = vmatprep.mubr.msk.f32.mxu0 %vm134_vm1, %v2504_v50 }
 0x898   :  { %4131 = vmatprep.subr.msk.mxu0 %vm134_vm1, %v2707_v51 }
 0x89a   :  { %4120 = vmatmul.mubr.msk.f32.gmra.mxu0 %vm134_vm1, %v2519_v52 }
 0x89b   :  { %4132 = vmatpush3.xpose.msk.msra.mxu0 %vm134_vm1, %v2707_v51  ;;  %4133 = vmatprep.mubr.msk.f32.mxu0 %vm134_vm1, %v4607_v55  ;;  %v1773_v55 = vadd.f32 %v4529_v0, %v4576_v17 }
 0x89e   :  { %4134 = vmatmul.mubr.msk.f32.vlgmr.msra.gmra.mxu0 %vm134_vm1, %v4624_v60  ;;  %v1768_v60 = vadd.f32 %v4537_v19, %v4578_v8 }
 0x90f   :  { %v2794_v53 = vpop.xlane.xlu1 %2793 }
 0x910   :  { %v2802_v16 = vsub.f32 %v4642_v41, %v2794_v53 }
 0x912   :  { %v2807_v59 = vmul.f32 1.442695, %v2802_v16 }
 0x914   :  { %4214 = vpow2.f32 %v2807_v59  ;;  %v2791_v57 = vpop.xlane.xlu0 %2790 }
 0x915   :  { %v2801_v61 = vsub.f32 %v2697_v58, %v2791_v57  ;;  %v1778_v58 = vadd.f32 %v4548_v33, %v4582_v18 }
 0x917   :  { %v2805_v62 = vmul.f32 1.442695, %v2801_v61 }
 0x919   :  { %4216 = vpow2.f32 %v2805_v62 }
 0x921   :  { %v4688_v54 = vpop.eup %4214 }
 0x922   :  { %v2816_v56 = vsel %vm307_vm3, %v4688_v54, 0.0 }
 0x923   :  { %2817 = vadd.xlane.f32.xlu1 %v2816_v56 }
 0x926   :  { %v4217_v31 = vpop.eup %4216 }
 0x927   :  { %v2813_v27 = vsel %vm303_vm2, %v4217_v31, 0.0 }
 0x956   :  { %v4118_v63 = vpop.f32.mrf.mxu0 }
 0x957   :  { %v4696_v41 = vadd.f32 %v4118_v63, %v1773_v55 }
 0x958   :  { %v2594_v2 = vpop.f32.mrf.mxu0 }
 0x959   :  { %v4700_v5 = vadd.f32 %v2594_v2, %v1768_v60 }
 0x95a   :  { %v4121_v1 = vpop.f32.mrf.mxu0 }
 0x95b   :  { %v4704_v20 = vadd.f32 %v4121_v1, %v1783_v4 }
 0x95c   :  { %v2604_v0 = vpop.f32.mrf.mxu0 }
 0x95d   :  { %v4706_v17 = vadd.f32 %v2604_v0, %v1778_v58 }
 0x95e   :  { %v4135_v21 = vpop.f32.mrf.mxu0 }
 0x95f   :  { %v2798_v22 = vsel %vm307_vm3, %v4135_v21, -inf }
 0x960   :  { %v2780_v19 = vpop.f32.mrf.mxu0 }
 0x961   :  { %v2795_v8 = vsel %vm303_vm2, %v2780_v19, -inf }
 0x962   :  { %2796 = vmax.xlane.f32.xlu0 %v2795_v8 }
 0x966   :  { %2799 = vmax.xlane.f32.xlu0 %v2798_v22 }
 0x96a   :  { %2814 = vadd.xlane.f32.xlu0 %v2813_v27 }
 0x9ac   :  { %v2818_v32 = vpop.xlane.xlu1 %2817 }
 0x9eb   :  { %v2797_v14 = vpop.xlane.xlu0 %2796 }
 0x9ec   :  { %v2803_v6 = vsub.f32 %v2780_v19, %v2797_v14 }
 0x9ee   :  { %v2809_v33 = vmul.f32 1.442695, %v2803_v6 }
 0x9ef   :  { %v2800_v18 = vpop.xlane.xlu0 %2799 }
 0x9f0   :  { %4218 = vpow2.f32 %v2809_v33  ;;  %v2804_v23 = vsub.f32 %v4135_v21, %v2800_v18 }
 0x9f2   :  { %v2811_v24 = vmul.f32 1.442695, %v2804_v23 }
 0x9f3   :  { %v2815_v25 = vpop.xlane.xlu0 %2814 }
 0x9f4   :  { %4220 = vpow2.f32 %v2811_v24 }
 0x9f5   :  { %4222 = vrcp.f32 %v2815_v25 }
 0x9f6   :  { %4224 = vrcp.f32 %v2818_v32 }
 0x9fd   :  { %v4219_v36 = vpop.eup %4218 }
 0x9fe   :  { %v2819_v26 = vsel %vm303_vm2, %v4219_v36, 0.0 }
 0x9ff   :  { %2820 = vadd.xlane.f32.xlu0 %v2819_v26 }
 0xa01   :  { %v4221_v28 = vpop.eup %4220 }
 0xa02   :  { %v4223_v30 = vpop.eup %4222  ;;  %v2822_v3 = vsel %vm307_vm3, %v4221_v28, 0.0 }
 0xa03   :  { %2823 = vadd.xlane.f32.xlu1 %v2822_v3  ;;  %v2829_v15 = vmul.f32 %v4223_v30, %v4217_v31  ;;  %v4225_v29 = vpop.eup %4224 }
 0xa05   :  { %4140 = vmatprep.mubr.msk.f32.mxu1 %vm303_vm2, %v2829_v15 }
 0xa14   :  { %2833 = vrot.lane.b32.xlu1 %v4305_v10, %s4237_s1  ;;  %v2830_v10 = vmul.f32 %v4225_v29, %v4688_v54 }
 0xa15   :  { %2835 = vrot.lane.b32.xlu0 %v4301_v9, %s4237_s1 }
 0xa18   :  { %2922 = vrot.lane.b32.xlu1 %v4311_v11, %s4237_s1 }
 0xa1c   :  { %2920 = vrot.lane.b32.xlu1 %v4315_v12, %s4237_s1 }
 0xa88   :  { %v2821_v35 = vpop.xlane.xlu0 %2820 }
 0xa89   :  { %4226 = vrcp.f32 %v2821_v35 }
 0xa8c   :  { %v2836_v37 = vpop.permute.xlu0 %2835  ;;  %v2824_v38 = vpop.xlane.xlu1 %2823 }
 0xa8d   :  { %4228 = vrcp.f32 %v2824_v38  ;;  %4136 = vmatprep.subr.mxu1 %v2836_v37 }
 0xa8e   :  { %4137 = vmatpush3.msra.mxu1 %v2836_v37 }
 0xa90   :  { %v2834_v34 = vpop.permute.xlu1 %2833 }
 0xa91   :  { %4138 = vmatprep.subr.mxu1 %v2834_v34 }
 0xa92   :  { %4139 = vmatpush3.msra.mxu1 %v2834_v34 }
 0xa93   :  { %4141 = vmatmul.mubr.msk.f32.vlgmr.msra.gmra.mxu1 %vm303_vm2, %v2830_v10  ;;  %4150 = vmatprep.subr.mxu1 %v3896_v7 }
 0xa94   :  { %v2923_v9 = vpop.permute.xlu1 %2922  ;;  %4151 = vmatpush3.msra.mxu1 %v3896_v7 }
 0xa95   :  { %4143 = vmatprep.subr.mxu0 %v2923_v9 }
 0xa96   :  { %v4227_v11 = vpop.eup %4226  ;;  %4144 = vmatpush3.msra.mxu0 %v2923_v9 }
 0xa97   :  { %v2831_v12 = vmul.f32 %v4227_v11, %v4219_v36 }
 0xa98   :  { %v2921_v39 = vpop.permute.xlu1 %2920 }
 0xa99   :  { %4145 = vmatprep.subr.mxu0 %v2921_v39  ;;  %4147 = vmatprep.mubr.msk.f32.mxu0 %vm303_vm2, %v2831_v12 }
 0xa9a   :  { %v4229_v40 = vpop.eup %4228  ;;  %4146 = vmatpush3.msra.mxu0 %v2921_v39 }
 0xa9b   :  { %v2832_v42 = vmul.f32 %v4229_v40, %v4221_v28 }
 0xa9d   :  { %4148 = vmatmul.mubr.msk.f32.vlgmr.msra.gmra.mxu0 %vm303_vm2, %v2832_v42 }
 0xb53   :  { %v4142_v43 = vpop.f32.mrf.mxu1 }
 0xb54   :  { %v3067_v44 = vrot.slane %v4142_v43, %v4380_v13  ;;  %v3060_v51 = vcombine.high %v4142_v43, %v4142_v43 }
 0xb55   :  { %v2911_v45 = vpop.f32.mrf.mxu1 }
 0xb56   :  { %v3075_v46 = vcombine.high %v3067_v44, %v3067_v44  ;;  %v3011_v47 = vcombine.high %v2911_v45, %v2911_v45  ;;  %v3018_v48 = vrot.slane %v2911_v45, %v4380_v13  ;;  %v3082_v54 = vrot.slane %v3067_v44, %v4380_v13 }
 0xb57   :  { %v3074_v63 = vrot.slane %v3060_v51, %v4380_v13 }
 0xb58   :  { %v3025_v49 = vrot.slane %v3011_v47, %v4380_v13  ;;  %v3026_v50 = vcombine.high %v3018_v48, %v3018_v48  ;;  %v3096_v52 = vrot.slane %v3075_v46, %v4380_v13  ;;  %v3034_v16 = vrot.slane %v3018_v48, %v4380_v13 }
 0xb59   :  { %v3089_v18 = vrot.slane %v3074_v63, %v4380_v13 }
 0xb5a   :  { %v3027_v53 = vcombine.high %v3025_v49, %v3025_v49  ;;  %v3048_v59 = vrot.slane %v3026_v50, %v4380_v13  ;;  %v3041_v56 = vrot.slane %v3025_v49, %v4380_v13  ;;  %v3238_v60 = vcombine.low %v3082_v54, %v3096_v52 }
 0xb5b   :  { %v3899_v1 = vcombine.high %v3082_v54, %v3096_v52 }
 0xb5c   :  { %v3055_v57 = vrot.slane %v3027_v53, %v4380_v13  ;;  %v3189_v61 = vcombine.low %v3034_v16, %v3048_v59  ;;  %v3897_v62 = vcombine.high %v3034_v16, %v3048_v59  ;;  %v3248_v25 = vrot.slane %v3238_v60, %v4380_v13 }
 0xb5d   :  { %v4149_v55 = vpop.f32.mrf.mxu0  ;;  %v3255_v36 = vrot.slane %v3899_v1, %v4380_v13 }
 0xb5e   :  { %v3191_v2 = vcombine.low %v3041_v56, %v3055_v57  ;;  %v3898_v4 = vcombine.high %v3041_v56, %v3055_v57  ;;  %v3199_v58 = vrot.slane %v3189_v61, %v4380_v13  ;;  %v3206_v0 = vrot.slane %v3897_v62, %v4380_v13 }
 0xb5f   :  { %v3155_v21 = vrot.slane %v4149_v55, %v4380_v13  ;;  %v2998_v19 = vpop.f32.mrf.mxu0  ;;  %v3148_v22 = vcombine.high %v4149_v55, %v4149_v55  ;;  %v3270_v43 = vcombine.low %v3248_v25, %v3255_v36 }
 0xb60   :  { %v3213_v8 = vrot.slane %v3191_v2, %v4380_v13  ;;  %v3220_v31 = vrot.slane %v3898_v4, %v4380_v13  ;;  %v3221_v27 = vcombine.low %v3199_v58, %v3206_v0  ;;  %v3099_v33 = vcombine.high %v2998_v19, %v2998_v19 }
 0xb61   :  { %v3163_v14 = vcombine.high %v3155_v21, %v3155_v21  ;;  %v3170_v6 = vrot.slane %v3155_v21, %v4380_v13  ;;  %v3106_v23 = vrot.slane %v2998_v19, %v4380_v13  ;;  %v3162_v35 = vrot.slane %v3148_v22, %v4380_v13  ;;  %v3904_v21 = vld [vmem:[%s4841_s4] ss:$0 sm:$0xff] }
 0xb62   :  { %v3222_v24 = vcombine.low %v3213_v8, %v3220_v31  ;;  %v3113_v28 = vrot.slane %v3099_v33, %v4380_v13  ;;  %v3229_v15 = vrot.slane %v3221_v27, %v4380_v13  ;;  %v3278_v57 = vrot.slane %v3270_v43, %v4380_v13 }
 0xb63   :  { %v3184_v26 = vrot.slane %v3163_v14, %v4380_v13  ;;  %v3114_v30 = vcombine.high %v3106_v23, %v3106_v23  ;;  %v3122_v3 = vrot.slane %v3106_v23, %v4380_v13  ;;  %v3185_v37 = vcombine.high %v3170_v6, %v3170_v6 }
 0xb64   :  { %v3236_v32 = vrot.slane %v3222_v24, %v4380_v13  ;;  %v3115_v38 = vcombine.high %v3113_v28, %v3113_v28  ;;  %v3129_v29 = vrot.slane %v3113_v28, %v4380_v13  ;;  %v3177_v47 = vrot.slane %v3162_v35, %v4380_v13 }
 0xb65   :  { %v3136_v34 = vrot.slane %v3114_v30, %v4380_v13  ;;  %v3144_v10 = vcombine.high %v3122_v3, %v3122_v3  ;;  %v3240_v9 = vcombine.low %v3089_v18, %v3122_v3  ;;  %v3186_v40 = vcombine.high %v3184_v26, %v3184_v26 }
 0xb66   :  { %v3237_v11 = vcombine.low %v3229_v15, %v3236_v32  ;;  %v3143_v12 = vrot.slane %v3115_v38, %v4380_v13  ;;  %v3145_v39 = vcombine.high %v3129_v29, %v3129_v29  ;;  %v3290_v44 = vcombine.low %v3184_v26, %v3185_v37 }
 0xb67   :  { %v3146_v42 = vcombine.high %v3136_v34, %v3136_v34  ;;  %v3241_v7 = vcombine.low %v3136_v34, %v3144_v10  ;;  %v3262_v48 = vrot.slane %v3240_v9, %v4380_v13  ;;  %v3336_v53 = vcombine.low %v3186_v40, %v3177_v47 }
 0xb68   :  { %4152 = vmatprep.mubr.msk.f32.mxu1 %vm134_vm1, %v3237_v11  ;;  %v3147_v45 = vcombine.high %v3143_v12, %v3143_v12  ;;  %v3288_v46 = vcombine.low %v3143_v12, %v3145_v39  ;;  %v3318_v54 = vrot.slane %v3290_v44, %v4380_v13 }
 0xb69   :  { %v3269_v49 = vrot.slane %v3241_v7, %v4380_v13  ;;  %v3287_v50 = vcombine.low %v3146_v42, %v3129_v29  ;;  %v3343_v60 = vrot.slane %v3336_v53, %v4380_v13 }
 0xb6a   :  { %v3289_v51 = vcombine.low %v3147_v45, %v3170_v6  ;;  %v3304_v52 = vrot.slane %v3288_v46, %v4380_v13 }
 0xb6b   :  { %v3271_v16 = vcombine.low %v3262_v48, %v3269_v49  ;;  %v3297_v59 = vrot.slane %v3287_v50, %v4380_v13  ;;  %v3350_v58 = vrot.slane %v3343_v60, %v4380_v13 }
 0xb6c   :  { %v3311_v56 = vrot.slane %v3289_v51, %v4380_v13 }
 0xb6d   :  { %v3285_v61 = vrot.slane %v3271_v16, %v4380_v13  ;;  %v3319_v62 = vcombine.low %v3297_v59, %v3304_v52 }
 0xb6e   :  { %v3320_v55 = vcombine.low %v3311_v56, %v3318_v54 }
 0xb6f   :  { %v3286_v63 = vcombine.low %v3278_v57, %v3285_v61  ;;  %v3327_v2 = vrot.slane %v3319_v62, %v4380_v13 }
 0xb70   :  { %v3334_v4 = vrot.slane %v3320_v55, %v4380_v13 }
 0xb71   :  { %4153 = vmatmul.mubr.msk.f32.vlgmr.msra.gmra.mxu1 %vm134_vm1, %v3286_v63 }
 0xb72   :  { %v3335_v1 = vcombine.low %v3327_v2, %v3334_v4 }
 0xb74   :  { %4155 = vmatprep.mubr.msk.f32.mxu1 %vm134_vm1, %v3335_v1 }
 0xb75   :  { %4156 = vmatmul.mubr.msk.f32.gmra.mxu1 %vm134_vm1, %v3350_v58 }
 0xc31   :  { %v4154_v0 = vpop.f32.mrf.mxu1 }
 0xc32   :  { %v3445_v19 = vadd.f32 %v4154_v0, %v4696_v41 }
 0xc33   :  { %v3425_v8 = vpop.f32.mrf.mxu1 }
 0xc34   :  { %v3456_v31 = vadd.f32 %v3904_v21, %v3445_v19  ;;  %v3444_v22 = vadd.f32 %v3425_v8, %v4700_v5 }
 0xc35   :  { %v4157_v27 = vpop.f32.mrf.mxu1 }
 0xc36   :  { %v3512_v14 = vcombine.high %v3456_v31, %v3456_v31  ;;  %v3519_v6 = vrot.slane %v3456_v31, %v4380_v13  ;;  %v3455_v33 = vadd.f32 %v3904_v21, %v3444_v22  ;;  %v3447_v36 = vadd.f32 %v4157_v27, %v4704_v20 }
 0xc37   :  { %v3435_v18 = vpop.f32.mrf.mxu1 }
 0xc38   :  { %v3526_v23 = vrot.slane %v3512_v14, %v4380_v13  ;;  %v3527_v24 = vcombine.high %v3519_v6, %v3519_v6  ;;  %v3463_v25 = vcombine.high %v3455_v33, %v3455_v33  ;;  %v3535_v26 = vrot.slane %v3519_v6, %v4380_v13 }
 0xc39   :  { %v3470_v41 = vrot.slane %v3455_v33, %v4380_v13  ;;  %v3446_v28 = vadd.f32 %v3435_v18, %v4706_v17  ;;  %v3458_v38 = vadd.f32 %v3904_v21, %v3447_v36 }
 0xc3a   :  { %v3528_v30 = vcombine.high %v3526_v23, %v3526_v23  ;;  %v3542_v5 = vrot.slane %v3526_v23, %v4380_v13  ;;  %v3549_v3 = vrot.slane %v3527_v24, %v4380_v13  ;;  %v3477_v15 = vrot.slane %v3463_v25, %v4380_v13 }
 0xc3b   :  { %v3478_v32 = vcombine.high %v3470_v41, %v3470_v41  ;;  %v3486_v20 = vrot.slane %v3470_v41, %v4380_v13  ;;  %v3457_v10 = vadd.f32 %v3904_v21, %v3446_v28  ;;  %v3616_v45 = vrot.slane %v3458_v38, %v4380_v13 }
 0xc3c   :  { %v3681_v35 = vcombine.low %v3535_v26, %v3549_v3  ;;  %v3907_v37 = vcombine.high %v3535_v26, %v3549_v3  ;;  %v3479_v29 = vcombine.high %v3477_v15, %v3477_v15  ;;  %v3556_v9 = vrot.slane %v3528_v30, %v4380_v13 }
 0xc3d   :  { %v3500_v34 = vrot.slane %v3478_v32, %v4380_v13  ;;  %v3703_v12 = vrot.slane %v3542_v5, %v4380_v13  ;;  %v3493_v39 = vrot.slane %v3477_v15, %v4380_v13  ;;  %v3558_v43 = vcombine.high %v3542_v5, %v3542_v5 }
 0xc3e   :  { %v3689_v17 = vrot.slane %v3681_v35, %v4380_v13  ;;  %v3696_v11 = vrot.slane %v3907_v37, %v4380_v13  ;;  %v3507_v40 = vrot.slane %v3479_v29, %v4380_v13  ;;  %v3561_v52 = vcombine.high %v3457_v10, %v3457_v10 }
 0xc3f   :  { %v3632_v42 = vcombine.low %v3486_v20, %v3500_v34  ;;  %v3905_v7 = vcombine.high %v3486_v20, %v3500_v34  ;;  %v3718_v51 = vrot.slane %v3703_v12, %v4380_v13  ;;  %v3568_v53 = vrot.slane %v3457_v10, %v4380_v13 }
 0xc40   :  { %v3704_v44 = vcombine.low %v3689_v17, %v3696_v11  ;;  %v3634_v46 = vcombine.low %v3493_v39, %v3507_v40  ;;  %v3906_v47 = vcombine.high %v3493_v39, %v3507_v40  ;;  %v3560_v56 = vcombine.high %v3556_v9, %v3556_v9 }
 0xc41   :  { %v3642_v48 = vrot.slane %v3632_v42, %v4380_v13  ;;  %v3649_v49 = vrot.slane %v3905_v7, %v4380_v13  ;;  %v3575_v61 = vrot.slane %v3561_v52, %v4380_v13  ;;  %v3576_v62 = vcombine.high %v3568_v53, %v3568_v53 }
 0xc42   :  { %v3711_v50 = vrot.slane %v3704_v44, %v4380_v13  ;;  %v3656_v16 = vrot.slane %v3634_v46, %v4380_v13  ;;  %v3663_v59 = vrot.slane %v3906_v47, %v4380_v13  ;;  %v3720_v55 = vcombine.low %v3556_v9, %v3558_v43 }
 0xc43   :  { %v3664_v54 = vcombine.low %v3642_v48, %v3649_v49  ;;  %v3584_v60 = vrot.slane %v3568_v53, %v4380_v13  ;;  %v3617_v2 = vcombine.high %v3616_v45, %v3616_v45  ;;  %v3577_v4 = vcombine.high %v3575_v61, %v3575_v61 }
 0xc44   :  { %v3719_v57 = vcombine.low %v3711_v50, %v3718_v51  ;;  %v3665_v63 = vcombine.low %v3656_v16, %v3663_v59  ;;  %v3591_v1 = vrot.slane %v3575_v61, %v4380_v13  ;;  %v3598_v58 = vrot.slane %v3576_v62, %v4380_v13 }
 0xc45   :  { %v3672_v0 = vrot.slane %v3664_v54, %v4380_v13  ;;  %v3606_v19 = vcombine.high %v3584_v60, %v3584_v60  ;;  %v3721_v8 = vcombine.low %v3560_v56, %v3584_v60  ;;  %v3624_v31 = vrot.slane %v3616_v45, %v4380_v13 }
 0xc46   :  { %3814 = vst.msk [vmem:[%s4842_s5 + $0x8] sm:$0x1f] %vm3813_vm4, %v3719_v57  ;;  %v3679_v21 = vrot.slane %v3665_v63, %v4380_v13  ;;  %v3605_v22 = vrot.slane %v3577_v4, %v4380_v13  ;;  %v3607_v27 = vcombine.high %v3591_v1, %v3591_v1  ;;  %v3608_v14 = vcombine.high %v3598_v58, %v3598_v58 }
 0xc47   :  { %v3722_v33 = vcombine.low %v3598_v58, %v3606_v19  ;;  %v3730_v18 = vrot.slane %v3720_v55, %v4380_v13  ;;  %v3737_v23 = vrot.slane %v3721_v8, %v4380_v13  ;;  %v3631_v24 = vrot.slane %v3617_v2, %v4380_v13 }
 0xc48   :  { %v3680_v6 = vcombine.low %v3672_v0, %v3679_v21  ;;  %v3609_v25 = vcombine.high %v3605_v22, %v3605_v22  ;;  %v3723_v36 = vcombine.low %v3608_v14, %v3591_v1  ;;  %v3769_v26 = vcombine.low %v3605_v22, %v3607_v27 }
 0xc49   :  { %v3752_v41 = vcombine.low %v3730_v18, %v3737_v23  ;;  %v3744_v28 = vrot.slane %v3722_v33, %v4380_v13  ;;  %v3791_v3 = vrot.slane %v3631_v24, %v4380_v13 }
 0xc4a   :  { %3812 = vst.msk [vmem:[%s4842_s5] sm:$0xff] %vm28_vm0, %v3680_v6  ;;  %v3751_v30 = vrot.slane %v3723_v36, %v4380_v13  ;;  %v3770_v5 = vcombine.low %v3609_v25, %v3624_v31  ;;  %v3777_v32 = vrot.slane %v3769_v26, %v4380_v13 }
 0xc4b   :  { %v3760_v37 = vrot.slane %v3752_v41, %v4380_v13  ;;  %v3806_v20 = vrot.slane %v3791_v3, %v4380_v13 }
 0xc4c   :  { %v3753_v15 = vcombine.low %v3744_v28, %v3751_v30  ;;  %v3784_v35 = vrot.slane %v3770_v5, %v4380_v13 }
 0xc4e   :  { %v3767_v38 = vrot.slane %v3753_v15, %v4380_v13  ;;  %v3792_v29 = vcombine.low %v3777_v32, %v3784_v35 }
 0xc50   :  { %v3768_v34 = vcombine.low %v3760_v37, %v3767_v38  ;;  %v3799_v10 = vrot.slane %v3792_v29, %v4380_v13 }
 0xc52   :  { %v3807_v9 = vcombine.low %v3799_v10, %v3806_v20  ;;  %3815 = vst.msk [vmem:[%s4842_s5 + $0x10] sm:$0xff] %vm28_vm0, %v3768_v34 }
 0xc54   :  { %3816 = vst.msk [vmem:[%s4842_s5 + $0x18] sm:$0x1f] %vm3813_vm4, %v3807_v9 }

</bundles_post_ra>
